<compile_context>
chip_gen: v7x
topology: tpu7x:2x2x1
jax: 0.10.0
libtpu: 0.0.40
codegen_flags: <defaults>
</compile_context>

<pallas_src>
import math
import functools

import jax
import jax.numpy as jnp
from jax import lax
from jax.experimental import pallas as pl
from jax.experimental.pallas import tpu as pltpu


def _mha_kernel(q_ref, h_ref, wq_ref, wk_ref, wv_ref, wo_ref, out_ref,
                *, n_heads, key_dim, val_dim):
    bt, n_query, input_dim = q_ref.shape
    _, graph_size, _ = h_ref.shape
    embed_dim = out_ref.shape[-1]

    # Flatten the batch tile into the sublane axis so the projections are
    # single large matmuls: (B_TILE*nq, id) @ (id, H*kd), etc.
    q2 = q_ref[...].reshape(bt * n_query, input_dim)
    h2 = h_ref[...].reshape(bt * graph_size, input_dim)

    # Fused QKV projections (norm_factor is pre-folded into wq in the wrapper).
    Q = jnp.dot(q2, wq_ref[...], preferred_element_type=jnp.float32)   # (bt*nq, H*kd)
    K = jnp.dot(h2, wk_ref[...], preferred_element_type=jnp.float32)   # (bt*G,  H*kd)
    V = jnp.dot(h2, wv_ref[...], preferred_element_type=jnp.float32)   # (bt*G,  H*vd)

    Q3 = Q.reshape(bt, n_query, n_heads * key_dim)
    K3 = K.reshape(bt, graph_size, n_heads * key_dim)
    V3 = V.reshape(bt, graph_size, n_heads * val_dim)

    # Per-head attention, batched over the B_TILE batches, with per-head
    # accumulation straight into the output projection (no concatenate).
    acc = jnp.zeros((bt, n_query, embed_dim), jnp.float32)
    for hd in range(n_heads):
        qh = Q3[:, :, hd * key_dim:(hd + 1) * key_dim]   # (bt, nq, kd) — scaled Q
        kh = K3[:, :, hd * key_dim:(hd + 1) * key_dim]   # (bt, G,  kd)
        vh = V3[:, :, hd * val_dim:(hd + 1) * val_dim]   # (bt, G,  vd)

        # compatibility = (norm * Q) @ K^T ; batched over dim 0, contract last dims.
        compat = lax.dot_general(
            qh, kh, (((2,), (2,)), ((0,), (0,))),
            preferred_element_type=jnp.float32)          # (bt, nq, G)

        m = jnp.max(compat, axis=-1, keepdims=True)
        p = jnp.exp(compat - m)
        denom = jnp.sum(p, axis=-1, keepdims=True)
        attn = p * pl.reciprocal(denom, approx=True)     # EUP slot

        head_out = lax.dot_general(
            attn, vh, (((2,), (1,)), ((0,), (0,))),
            preferred_element_type=jnp.float32)          # (bt, nq, vd)

        # Static row slice of the resident W_out block (free); accumulate the
        # head's contribution to the output projection.
        wo_h = wo_ref[hd * val_dim:(hd + 1) * val_dim, :]        # (vd, embed)
        acc = acc + lax.dot_general(
            head_out, wo_h, (((2,), (0,)), ((), ())),
            preferred_element_type=jnp.float32)          # (bt, nq, embed)

    out_ref[...] = acc.astype(out_ref.dtype)


def multi_head_attention(q, h, W_query, W_key, W_val, W_out, *, b_tile=None):
    B, n_query, input_dim = q.shape
    _, graph_size, _ = h.shape
    n_heads, _, key_dim = W_query.shape
    val_dim = W_val.shape[-1]
    embed_dim = W_out.shape[-1]
    # PyTorch's `heads @ W_out.view(-1, embed_dim)` requires the W_out row
    # blocks to have val_dim rows (key_dim == val_dim in the module's default).
    assert W_out.shape[1] == val_dim, "W_out middle dim must equal val_dim"
    norm_factor = 1.0 / math.sqrt(key_dim)

    # Batch tile: amortize grid-step overhead; keep grid extent >= 2 when B > 1
    # so both v7x TensorCores get work.  VMEM footprint per step at these dims
    # is tiny (<< the 32 MiB scoped default on every generation).
    if b_tile is None:
        b_tile = min(256, max(1, pl.cdiv(B, 2)))
    grid_b = pl.cdiv(B, b_tile)
    b_pad = grid_b * b_tile
    q_p, h_p = q, h
    if b_pad != B:
        q_p = jnp.pad(q, ((0, b_pad - B), (0, 0), (0, 0)))
        h_p = jnp.pad(h, ((0, b_pad - B), (0, 0), (0, 0)))

    # Fuse the head axis into the weights (head-major along the fused axis) so
    # the kernel does one wide projection per tensor; fold norm_factor into
    # the query weights (one-time transform, removes a per-step VPU scale).
    wq_f = (norm_factor
            * jnp.transpose(W_query, (1, 0, 2))).reshape(input_dim, n_heads * key_dim)
    wk_f = jnp.transpose(W_key, (1, 0, 2)).reshape(input_dim, n_heads * key_dim)
    wv_f = jnp.transpose(W_val, (1, 0, 2)).reshape(input_dim, n_heads * val_dim)
    wo_f = W_out.reshape(n_heads * val_dim, embed_dim)   # head-major rows

    kernel = functools.partial(_mha_kernel, n_heads=n_heads, key_dim=key_dim,
                               val_dim=val_dim)

    flops = 2 * b_pad * (
        n_query * input_dim * n_heads * key_dim            # Q projection
        + graph_size * input_dim * n_heads * key_dim       # K projection
        + graph_size * input_dim * n_heads * val_dim       # V projection
        + n_heads * n_query * graph_size * key_dim         # Q @ K^T
        + n_heads * n_query * graph_size * val_dim         # attn @ V
        + n_query * n_heads * val_dim * embed_dim)         # output projection
    transcendentals = b_pad * n_heads * n_query * graph_size   # exp in softmax
    bytes_accessed = 4 * (q_p.size + h_p.size + wq_f.size + wk_f.size
                          + wv_f.size + wo_f.size + b_pad * n_query * embed_dim)

    out = pl.pallas_call(
        kernel,
        out_shape=jax.ShapeDtypeStruct((b_pad, n_query, embed_dim), q.dtype),
        grid=(grid_b,),
        in_specs=[
            pl.BlockSpec((b_tile, n_query, input_dim), lambda b: (b, 0, 0)),
            pl.BlockSpec((b_tile, graph_size, input_dim), lambda b: (b, 0, 0)),
            # Weights: full-array blocks with constant index maps -> DMA'd once,
            # resident in VMEM across all batch-tile steps.
            pl.BlockSpec((input_dim, n_heads * key_dim), lambda b: (0, 0)),
            pl.BlockSpec((input_dim, n_heads * key_dim), lambda b: (0, 0)),
            pl.BlockSpec((input_dim, n_heads * val_dim), lambda b: (0, 0)),
            pl.BlockSpec((n_heads * val_dim, embed_dim), lambda b: (0, 0)),
        ],
        out_specs=pl.BlockSpec((b_tile, n_query, embed_dim), lambda b: (b, 0, 0)),
        compiler_params=pltpu.CompilerParams(
            dimension_semantics=("parallel",)),
        cost_estimate=pl.CostEstimate(flops=flops,
                                      transcendentals=transcendentals,
                                      bytes_accessed=bytes_accessed),
    )(q_p, h_p, wq_f, wk_f, wv_f, wo_f)

    return out[:B] if b_pad != B else out


def _init_param(key, shape):
    # Matches nn.Parameter init: uniform(-stdv, stdv), stdv = 1/sqrt(last dim)
    stdv = 1.0 / math.sqrt(shape[-1])
    return jax.random.uniform(key, shape, jnp.float32, minval=-stdv, maxval=stdv)


def _reference(q, h, W_query, W_key, W_val, W_out, norm_factor):
    # Pure-JAX reference mirroring the PyTorch forward (mask=None).
    Q = jnp.einsum('bnd,hdk->hbnk', q, W_query)
    K = jnp.einsum('bgd,hdk->hbgk', h, W_key)
    V = jnp.einsum('bgd,hdv->hbgv', h, W_val)
    compat = norm_factor * jnp.einsum('hbnk,hbgk->hbng', Q, K)
    attn = jax.nn.softmax(compat, axis=-1)
    heads = jnp.einsum('hbng,hbgv->hbnv', attn, V)
    out = jnp.einsum('hbnv,hve->bne', heads, W_out)
    return out


if __name__ == "__main__":
    # Small, module-consistent shapes.
    n_heads = 4
    input_dim = 32
    embed_dim = 32
    key_dim = val_dim = embed_dim // n_heads  # 8
    B, n_query, graph_size = 8, 8, 8          # b_tile -> 4, grid -> 2

    key = jax.random.PRNGKey(0)
    kq, kh, kwq, kwk, kwv, kwo = jax.random.split(key, 6)

    q = jax.random.normal(kq, (B, n_query, input_dim), jnp.float32)
    h = jax.random.normal(kh, (B, graph_size, input_dim), jnp.float32)

    W_query = _init_param(kwq, (n_heads, input_dim, key_dim))
    W_key = _init_param(kwk, (n_heads, input_dim, key_dim))
    W_val = _init_param(kwv, (n_heads, input_dim, val_dim))
    W_out = _init_param(kwo, (n_heads, key_dim, embed_dim))  # key_dim == val_dim

    out = multi_head_attention(q, h, W_query, W_key, W_val, W_out)
    out = jax.block_until_ready(out)

    ref = _reference(q, h, W_query, W_key, W_val, W_out,
                     1.0 / math.sqrt(key_dim))
    assert out.shape == (B, n_query, embed_dim)
    # Slightly loose tolerance: pl.reciprocal(approx=True) in the softmax.
    assert jnp.allclose(out, ref, atol=2e-3, rtol=2e-3), "mismatch vs reference"

    print("KERNEL_OK")
</pallas_src>

<mosaic_0001>
module attributes {stable_mosaic.version = 11 : i64} {
  func.func @_mha_kernel(%arg0: i32, %arg1: memref<4x8x32xf32, #tpu.memory_space<vmem>>, %arg2: memref<4x8x32xf32, #tpu.memory_space<vmem>>, %arg3: memref<32x32xf32, #tpu.memory_space<vmem>>, %arg4: memref<32x32xf32, #tpu.memory_space<vmem>>, %arg5: memref<32x32xf32, #tpu.memory_space<vmem>>, %arg6: memref<32x32xf32, #tpu.memory_space<vmem>>, %arg7: memref<4x8x32xf32, #tpu.memory_space<vmem>>) attributes {dimension_semantics = [#tpu.dimension_semantics<parallel>], iteration_bounds = array<i64: 2>, scalar_prefetch = 0 : i64, scratch_operands = 0 : i64, tpu.core_type = #tpu.core_type<tc>, window_params = [{transform_indices = @transform_0, window_bounds = array<i64: 4, 8, 32>}, {transform_indices = @transform_1, window_bounds = array<i64: 4, 8, 32>}, {pipeline_mode = #tpu.pipeline_mode<synchronous>, transform_indices = @transform_2, window_bounds = array<i64: 32, 32>}, {pipeline_mode = #tpu.pipeline_mode<synchronous>, transform_indices = @transform_3, window_bounds = array<i64: 32, 32>}, {pipeline_mode = #tpu.pipeline_mode<synchronous>, transform_indices = @transform_4, window_bounds = array<i64: 32, 32>}, {pipeline_mode = #tpu.pipeline_mode<synchronous>, transform_indices = @transform_5, window_bounds = array<i64: 32, 32>}, {transform_indices = @transform_6, window_bounds = array<i64: 4, 8, 32>}]} {
    %c0 = arith.constant 0 : index
    %c0_0 = arith.constant 0 : index
    %c0_1 = arith.constant 0 : index
    %0 = vector.load %arg1[%c0, %c0_0, %c0_1] : memref<4x8x32xf32, #tpu.memory_space<vmem>>, vector<4x8x32xf32>
    %1 = vector.shape_cast %0 : vector<4x8x32xf32> to vector<32x32xf32>
    %c0_2 = arith.constant 0 : index
    %c0_3 = arith.constant 0 : index
    %c0_4 = arith.constant 0 : index
    %2 = vector.load %arg2[%c0_2, %c0_3, %c0_4] : memref<4x8x32xf32, #tpu.memory_space<vmem>>, vector<4x8x32xf32>
    %3 = vector.shape_cast %2 : vector<4x8x32xf32> to vector<32x32xf32>
    %c0_5 = arith.constant 0 : index
    %c0_6 = arith.constant 0 : index
    %4 = vector.load %arg3[%c0_5, %c0_6] : memref<32x32xf32, #tpu.memory_space<vmem>>, vector<32x32xf32>
    %cst = arith.constant dense<0.000000e+00> : vector<32x32xf32>
    %5 = tpu.matmul %1, %4, %cst {dimension_numbers = #tpu.dot_dimension_numbers<[1], [0], [0], [1], [0, 0, 1, 1], [], []>} : vector<32x32xf32>, vector<32x32xf32>, vector<32x32xf32> -> vector<32x32xf32>
    %c0_7 = arith.constant 0 : index
    %c0_8 = arith.constant 0 : index
    %6 = vector.load %arg4[%c0_7, %c0_8] : memref<32x32xf32, #tpu.memory_space<vmem>>, vector<32x32xf32>
    %cst_9 = arith.constant dense<0.000000e+00> : vector<32x32xf32>
    %7 = tpu.matmul %3, %6, %cst_9 {dimension_numbers = #tpu.dot_dimension_numbers<[1], [0], [0], [1], [0, 0, 1, 1], [], []>} : vector<32x32xf32>, vector<32x32xf32>, vector<32x32xf32> -> vector<32x32xf32>
    %c0_10 = arith.constant 0 : index
    %c0_11 = arith.constant 0 : index
    %8 = vector.load %arg5[%c0_10, %c0_11] : memref<32x32xf32, #tpu.memory_space<vmem>>, vector<32x32xf32>
    %cst_12 = arith.constant dense<0.000000e+00> : vector<32x32xf32>
    %9 = tpu.matmul %3, %8, %cst_12 {dimension_numbers = #tpu.dot_dimension_numbers<[1], [0], [0], [1], [0, 0, 1, 1], [], []>} : vector<32x32xf32>, vector<32x32xf32>, vector<32x32xf32> -> vector<32x32xf32>
    %10 = vector.shape_cast %5 : vector<32x32xf32> to vector<4x8x32xf32>
    %11 = vector.shape_cast %7 : vector<32x32xf32> to vector<4x8x32xf32>
    %12 = vector.shape_cast %9 : vector<32x32xf32> to vector<4x8x32xf32>
    %cst_13 = arith.constant 0.000000e+00 : f32
    %13 = vector.broadcast %cst_13 : f32 to vector<4x8x32xf32>
    %14 = vector.extract_strided_slice %10 {offsets = [0, 0, 0], sizes = [4, 8, 8], strides = [1, 1, 1]} : vector<4x8x32xf32> to vector<4x8x8xf32>
    %15 = vector.extract_strided_slice %11 {offsets = [0, 0, 0], sizes = [4, 8, 8], strides = [1, 1, 1]} : vector<4x8x32xf32> to vector<4x8x8xf32>
    %16 = vector.extract_strided_slice %12 {offsets = [0, 0, 0], sizes = [4, 8, 8], strides = [1, 1, 1]} : vector<4x8x32xf32> to vector<4x8x8xf32>
    %cst_14 = arith.constant dense<0.000000e+00> : vector<4x8x8xf32>
    %17 = tpu.matmul %14, %15, %cst_14 {dimension_numbers = #tpu.dot_dimension_numbers<[2], [2], [1], [1], [0, 0, 0, 1, 1, 1], [0], [0]>} : vector<4x8x8xf32>, vector<4x8x8xf32>, vector<4x8x8xf32> -> vector<4x8x8xf32>
    %cst_15 = arith.constant dense<0xFF800000> : vector<4x8xf32>
    %18 = vector.multi_reduction <maximumf>, %17, %cst_15 [2] : vector<4x8x8xf32> to vector<4x8xf32>
    %19 = vector.shape_cast %18 : vector<4x8xf32> to vector<4x8x1xf32>
    %20 = vector.broadcast %19 : vector<4x8x1xf32> to vector<4x8x8xf32>
    %21 = arith.subf %17, %20 : vector<4x8x8xf32>
    %22 = math.exp %21 : vector<4x8x8xf32>
    %cst_16 = arith.constant dense<0.000000e+00> : vector<4x8xf32>
    %23 = vector.multi_reduction <add>, %22, %cst_16 [2] : vector<4x8x8xf32> to vector<4x8xf32>
    %24 = vector.shape_cast %23 : vector<4x8xf32> to vector<4x8x1xf32>
    %25 = tpu.reciprocal %24 {approx = true} : vector<4x8x1xf32> -> vector<4x8x1xf32>
    %26 = vector.broadcast %25 : vector<4x8x1xf32> to vector<4x8x8xf32>
    %27 = arith.mulf %22, %26 : vector<4x8x8xf32>
    %cst_17 = arith.constant dense<0.000000e+00> : vector<4x8x8xf32>
    %28 = tpu.matmul %27, %16, %cst_17 {dimension_numbers = #tpu.dot_dimension_numbers<[2], [1], [1], [2], [0, 0, 0, 1, 1, 2], [0], [0]>} : vector<4x8x8xf32>, vector<4x8x8xf32>, vector<4x8x8xf32> -> vector<4x8x8xf32>
    %c0_18 = arith.constant 0 : index
    %c0_19 = arith.constant 0 : index
    %29 = vector.load %arg6[%c0_18, %c0_19] : memref<32x32xf32, #tpu.memory_space<vmem>>, vector<8x32xf32>
    %cst_20 = arith.constant dense<0.000000e+00> : vector<4x8x32xf32>
    %30 = tpu.matmul %28, %29, %cst_20 {dimension_numbers = #tpu.dot_dimension_numbers<[2], [0], [0, 1], [1], [0, 0, 0, 1, 1, 1], [], []>} : vector<4x8x8xf32>, vector<8x32xf32>, vector<4x8x32xf32> -> vector<4x8x32xf32>
    %31 = arith.addf %13, %30 : vector<4x8x32xf32>
    %32 = vector.extract_strided_slice %10 {offsets = [0, 0, 8], sizes = [4, 8, 8], strides = [1, 1, 1]} : vector<4x8x32xf32> to vector<4x8x8xf32>
    %33 = vector.extract_strided_slice %11 {offsets = [0, 0, 8], sizes = [4, 8, 8], strides = [1, 1, 1]} : vector<4x8x32xf32> to vector<4x8x8xf32>
    %34 = vector.extract_strided_slice %12 {offsets = [0, 0, 8], sizes = [4, 8, 8], strides = [1, 1, 1]} : vector<4x8x32xf32> to vector<4x8x8xf32>
    %cst_21 = arith.constant dense<0.000000e+00> : vector<4x8x8xf32>
    %35 = tpu.matmul %32, %33, %cst_21 {dimension_numbers = #tpu.dot_dimension_numbers<[2], [2], [1], [1], [0, 0, 0, 1, 1, 1], [0], [0]>} : vector<4x8x8xf32>, vector<4x8x8xf32>, vector<4x8x8xf32> -> vector<4x8x8xf32>
    %cst_22 = arith.constant dense<0xFF800000> : vector<4x8xf32>
    %36 = vector.multi_reduction <maximumf>, %35, %cst_22 [2] : vector<4x8x8xf32> to vector<4x8xf32>
    %37 = vector.shape_cast %36 : vector<4x8xf32> to vector<4x8x1xf32>
    %38 = vector.broadcast %37 : vector<4x8x1xf32> to vector<4x8x8xf32>
    %39 = arith.subf %35, %38 : vector<4x8x8xf32>
    %40 = math.exp %39 : vector<4x8x8xf32>
    %cst_23 = arith.constant dense<0.000000e+00> : vector<4x8xf32>
    %41 = vector.multi_reduction <add>, %40, %cst_23 [2] : vector<4x8x8xf32> to vector<4x8xf32>
    %42 = vector.shape_cast %41 : vector<4x8xf32> to vector<4x8x1xf32>
    %43 = tpu.reciprocal %42 {approx = true} : vector<4x8x1xf32> -> vector<4x8x1xf32>
    %44 = vector.broadcast %43 : vector<4x8x1xf32> to vector<4x8x8xf32>
    %45 = arith.mulf %40, %44 : vector<4x8x8xf32>
    %cst_24 = arith.constant dense<0.000000e+00> : vector<4x8x8xf32>
    %46 = tpu.matmul %45, %34, %cst_24 {dimension_numbers = #tpu.dot_dimension_numbers<[2], [1], [1], [2], [0, 0, 0, 1, 1, 2], [0], [0]>} : vector<4x8x8xf32>, vector<4x8x8xf32>, vector<4x8x8xf32> -> vector<4x8x8xf32>
    %c8 = arith.constant 8 : index
    %c0_25 = arith.constant 0 : index
    %47 = vector.load %arg6[%c8, %c0_25] : memref<32x32xf32, #tpu.memory_space<vmem>>, vector<8x32xf32>
    %cst_26 = arith.constant dense<0.000000e+00> : vector<4x8x32xf32>
    %48 = tpu.matmul %46, %47, %cst_26 {dimension_numbers = #tpu.dot_dimension_numbers<[2], [0], [0, 1], [1], [0, 0, 0, 1, 1, 1], [], []>} : vector<4x8x8xf32>, vector<8x32xf32>, vector<4x8x32xf32> -> vector<4x8x32xf32>
    %49 = arith.addf %31, %48 : vector<4x8x32xf32>
    %50 = vector.extract_strided_slice %10 {offsets = [0, 0, 16], sizes = [4, 8, 8], strides = [1, 1, 1]} : vector<4x8x32xf32> to vector<4x8x8xf32>
    %51 = vector.extract_strided_slice %11 {offsets = [0, 0, 16], sizes = [4, 8, 8], strides = [1, 1, 1]} : vector<4x8x32xf32> to vector<4x8x8xf32>
    %52 = vector.extract_strided_slice %12 {offsets = [0, 0, 16], sizes = [4, 8, 8], strides = [1, 1, 1]} : vector<4x8x32xf32> to vector<4x8x8xf32>
    %cst_27 = arith.constant dense<0.000000e+00> : vector<4x8x8xf32>
    %53 = tpu.matmul %50, %51, %cst_27 {dimension_numbers = #tpu.dot_dimension_numbers<[2], [2], [1], [1], [0, 0, 0, 1, 1, 1], [0], [0]>} : vector<4x8x8xf32>, vector<4x8x8xf32>, vector<4x8x8xf32> -> vector<4x8x8xf32>
    %cst_28 = arith.constant dense<0xFF800000> : vector<4x8xf32>
    %54 = vector.multi_reduction <maximumf>, %53, %cst_28 [2] : vector<4x8x8xf32> to vector<4x8xf32>
    %55 = vector.shape_cast %54 : vector<4x8xf32> to vector<4x8x1xf32>
    %56 = vector.broadcast %55 : vector<4x8x1xf32> to vector<4x8x8xf32>
    %57 = arith.subf %53, %56 : vector<4x8x8xf32>
    %58 = math.exp %57 : vector<4x8x8xf32>
    %cst_29 = arith.constant dense<0.000000e+00> : vector<4x8xf32>
    %59 = vector.multi_reduction <add>, %58, %cst_29 [2] : vector<4x8x8xf32> to vector<4x8xf32>
    %60 = vector.shape_cast %59 : vector<4x8xf32> to vector<4x8x1xf32>
    %61 = tpu.reciprocal %60 {approx = true} : vector<4x8x1xf32> -> vector<4x8x1xf32>
    %62 = vector.broadcast %61 : vector<4x8x1xf32> to vector<4x8x8xf32>
    %63 = arith.mulf %58, %62 : vector<4x8x8xf32>
    %cst_30 = arith.constant dense<0.000000e+00> : vector<4x8x8xf32>
    %64 = tpu.matmul %63, %52, %cst_30 {dimension_numbers = #tpu.dot_dimension_numbers<[2], [1], [1], [2], [0, 0, 0, 1, 1, 2], [0], [0]>} : vector<4x8x8xf32>, vector<4x8x8xf32>, vector<4x8x8xf32> -> vector<4x8x8xf32>
    %c16 = arith.constant 16 : index
    %c0_31 = arith.constant 0 : index
    %65 = vector.load %arg6[%c16, %c0_31] : memref<32x32xf32, #tpu.memory_space<vmem>>, vector<8x32xf32>
    %cst_32 = arith.constant dense<0.000000e+00> : vector<4x8x32xf32>
    %66 = tpu.matmul %64, %65, %cst_32 {dimension_numbers = #tpu.dot_dimension_numbers<[2], [0], [0, 1], [1], [0, 0, 0, 1, 1, 1], [], []>} : vector<4x8x8xf32>, vector<8x32xf32>, vector<4x8x32xf32> -> vector<4x8x32xf32>
    %67 = arith.addf %49, %66 : vector<4x8x32xf32>
    %68 = vector.extract_strided_slice %10 {offsets = [0, 0, 24], sizes = [4, 8, 8], strides = [1, 1, 1]} : vector<4x8x32xf32> to vector<4x8x8xf32>
    %69 = vector.extract_strided_slice %11 {offsets = [0, 0, 24], sizes = [4, 8, 8], strides = [1, 1, 1]} : vector<4x8x32xf32> to vector<4x8x8xf32>
    %70 = vector.extract_strided_slice %12 {offsets = [0, 0, 24], sizes = [4, 8, 8], strides = [1, 1, 1]} : vector<4x8x32xf32> to vector<4x8x8xf32>
    %cst_33 = arith.constant dense<0.000000e+00> : vector<4x8x8xf32>
    %71 = tpu.matmul %68, %69, %cst_33 {dimension_numbers = #tpu.dot_dimension_numbers<[2], [2], [1], [1], [0, 0, 0, 1, 1, 1], [0], [0]>} : vector<4x8x8xf32>, vector<4x8x8xf32>, vector<4x8x8xf32> -> vector<4x8x8xf32>
    %cst_34 = arith.constant dense<0xFF800000> : vector<4x8xf32>
    %72 = vector.multi_reduction <maximumf>, %71, %cst_34 [2] : vector<4x8x8xf32> to vector<4x8xf32>
    %73 = vector.shape_cast %72 : vector<4x8xf32> to vector<4x8x1xf32>
    %74 = vector.broadcast %73 : vector<4x8x1xf32> to vector<4x8x8xf32>
    %75 = arith.subf %71, %74 : vector<4x8x8xf32>
    %76 = math.exp %75 : vector<4x8x8xf32>
    %cst_35 = arith.constant dense<0.000000e+00> : vector<4x8xf32>
    %77 = vector.multi_reduction <add>, %76, %cst_35 [2] : vector<4x8x8xf32> to vector<4x8xf32>
    %78 = vector.shape_cast %77 : vector<4x8xf32> to vector<4x8x1xf32>
    %79 = tpu.reciprocal %78 {approx = true} : vector<4x8x1xf32> -> vector<4x8x1xf32>
    %80 = vector.broadcast %79 : vector<4x8x1xf32> to vector<4x8x8xf32>
    %81 = arith.mulf %76, %80 : vector<4x8x8xf32>
    %cst_36 = arith.constant dense<0.000000e+00> : vector<4x8x8xf32>
    %82 = tpu.matmul %81, %70, %cst_36 {dimension_numbers = #tpu.dot_dimension_numbers<[2], [1], [1], [2], [0, 0, 0, 1, 1, 2], [0], [0]>} : vector<4x8x8xf32>, vector<4x8x8xf32>, vector<4x8x8xf32> -> vector<4x8x8xf32>
    %c24 = arith.constant 24 : index
    %c0_37 = arith.constant 0 : index
    %83 = vector.load %arg6[%c24, %c0_37] : memref<32x32xf32, #tpu.memory_space<vmem>>, vector<8x32xf32>
    %cst_38 = arith.constant dense<0.000000e+00> : vector<4x8x32xf32>
    %84 = tpu.matmul %82, %83, %cst_38 {dimension_numbers = #tpu.dot_dimension_numbers<[2], [0], [0, 1], [1], [0, 0, 0, 1, 1, 1], [], []>} : vector<4x8x8xf32>, vector<8x32xf32>, vector<4x8x32xf32> -> vector<4x8x32xf32>
    %85 = arith.addf %67, %84 : vector<4x8x32xf32>
    %c0_39 = arith.constant 0 : index
    %c0_40 = arith.constant 0 : index
    %c0_41 = arith.constant 0 : index
    %86 = vector.load %arg7[%c0_39, %c0_40, %c0_41] : memref<4x8x32xf32, #tpu.memory_space<vmem>>, vector<4x8x32xf32>
    tpu.vector_store %arg7[%c0_39, %c0_40, %c0_41], %85 {strides = array<i32>} : memref<4x8x32xf32, #tpu.memory_space<vmem>>, vector<4x8x32xf32>,
    return
  }
  func.func @transform_0(%arg0: i32) -> (i32, i32, i32) {
    %c0_i32 = arith.constant 0 : i32
    %c0_i32_0 = arith.constant 0 : i32
    %c0_i32_1 = arith.constant 0 : i32
    return %arg0, %c0_i32, %c0_i32_0 : i32, i32, i32
  }
  func.func @transform_1(%arg0: i32) -> (i32, i32, i32) {
    %c0_i32 = arith.constant 0 : i32
    %c0_i32_0 = arith.constant 0 : i32
    %c0_i32_1 = arith.constant 0 : i32
    return %arg0, %c0_i32, %c0_i32_0 : i32, i32, i32
  }
  func.func @transform_2(%arg0: i32) -> (i32, i32) {
    %c0_i32 = arith.constant 0 : i32
    %c0_i32_0 = arith.constant 0 : i32
    %c0_i32_1 = arith.constant 0 : i32
    return %c0_i32, %c0_i32_0 : i32, i32
  }
  func.func @transform_3(%arg0: i32) -> (i32, i32) {
    %c0_i32 = arith.constant 0 : i32
    %c0_i32_0 = arith.constant 0 : i32
    %c0_i32_1 = arith.constant 0 : i32
    return %c0_i32, %c0_i32_0 : i32, i32
  }
  func.func @transform_4(%arg0: i32) -> (i32, i32) {
    %c0_i32 = arith.constant 0 : i32
    %c0_i32_0 = arith.constant 0 : i32
    %c0_i32_1 = arith.constant 0 : i32
    return %c0_i32, %c0_i32_0 : i32, i32
  }
  func.func @transform_5(%arg0: i32) -> (i32, i32) {
    %c0_i32 = arith.constant 0 : i32
    %c0_i32_0 = arith.constant 0 : i32
    %c0_i32_1 = arith.constant 0 : i32
    return %c0_i32, %c0_i32_0 : i32, i32
  }
  func.func @transform_6(%arg0: i32) -> (i32, i32, i32) {
    %c0_i32 = arith.constant 0 : i32
    %c0_i32_0 = arith.constant 0 : i32
    %c0_i32_1 = arith.constant 0 : i32
    return %arg0, %c0_i32, %c0_i32_0 : i32, i32, i32
  }
}

</mosaic_0001>

<bundles_post_ra>
// kernel: tpu_custom_call.1
= control target key start
LH: loop header
LB: loop body
LE: loop exit
PB: predicated region body
PF: predicated region fallthrough
CT: control target
= control target key end

     0   :  { %s5507_s0 = inlined_call_operand.hbm [shape: f32[8,8,32], index: 0, kind: input, shape index: {}]   ;;  %s5508_s1 = inlined_call_operand.hbm [shape: f32[8,8,32], index: 1, kind: input, shape index: {}]   ;;  %s5509_s2 = inlined_call_operand.hbm [shape: f32[32,32], index: 2, kind: input, shape index: {}]   ;;  %s5510_s3 = inlined_call_operand.hbm [shape: f32[32,32], index: 3, kind: input, shape index: {}]   ;;  %s5511_s4 = inlined_call_operand.hbm [shape: f32[32,32], index: 4, kind: input, shape index: {}]   ;;  %s5512_s5 = inlined_call_operand.hbm [shape: f32[32,32], index: 5, kind: input, shape index: {}]   ;;  %s5513_s6 = inlined_call_operand.hbm [shape: f32[8,8,32], index: 6, kind: output, shape index: {}]  }
   0x1   :  { %5521 = sst [smem:[#allocation20_spill]] %s5507_s0 }
   0x2   :  { %5522 = sst [smem:[#allocation21_spill]] %s5509_s2 }
   0x3   :  { %5523 = sst [smem:[#allocation22_spill]] %s5510_s3 }
   0x4   :  { %11 = vsyncpa [#allocation3], 0 }
   0x5   :  { %13 = vsyncpa [#allocation3 + $0x1], 0 }
   0x6   :  { %14 = vsyncpa [#allocation6], 0 }
   0x7   :  { %16 = vsyncpa [#allocation6 + $0x1], 0 }
   0x8   :  { %17 = vsyncpa [#allocation9], 0 }
   0x9   :  { %18 = vsyncpa [#allocation12], 0 }
   0xa   :  { %19 = vsyncpa [#allocation4], 0 }
   0xb   :  { %21 = vsyncpa [#allocation4 + $0x1], 0  ;;  %s4807_s21 = smov 0   ;;  %s4809_s22 = smov 0  }
   0xc   :  { %s4811_s23 = smov 0   ;;  %s4813_s24 = smov 0  }
   0xd LB: > { %s4828_s25 = sadd.s32 4294967295, %s4754_s24   ;;  %s3848_s26 = sadd.s32 4294967294, %s4754_s24   ;;  %s4754_s24 = sphi %s4813_s24, %s5550_s24   ;;  %s4750_s23 = sphi %s4811_s23, %s5549_s23   ;;  %s4746_s22 = sphi %s4809_s22, %s5548_s22   ;;  %s4742_s21 = sphi %s4807_s21, %s5547_s21  }
   0xe   : > { %p47_p0 = scmp.ne.s32.totalorder %s4746_s22, %s4742_s21  ;;  %p5514_p1 = scmp.eq.s32.totalorder %s4828_s25, 0 }
   0xf   : > { %p187_p3 = scmp.eq.s32.totalorder %s3848_s26, 1  ;;  %p3849_p5 = scmp.ge.s32.totalorder %s4754_s24, 1 }
  0x10   : > { %p4837_p4 = por %p5514_p1, %p47_p0  ;;  %p194_p7 = scmp.lt.s32.totalorder %s4754_s24, 3 }
  0x11   : > { %p4842_p6 = por %p187_p3, %p47_p0  ;;  %s4756_s30 = smov [#allocation7]  }
  0x12   : > { %s5524_s27 = scalar_select %p4837_p4, 1, 0 }
  0x13   : > { %s5525_s28 = scalar_select %p4842_p6, 1, 0 }
  0x14   : > { %p4847_p8 = pnand %p3849_p5, %p194_p7  ;;  %s206_s7 = sshll.u32 %s4756_s30, 4  ;;  %s4851_s7 = int_to_ptr.vmem [resolvable:$true] %s206_s7 }
  0x15   : > { %s4757_s9 = smov [#allocation8]   ;;  %s4758_s11 = smov [#allocation10]  }
  0x16   : > { %s5526_s29 = scalar_select %p4847_p8, 1, 0 }
  0x17   : > { %p4357_p9 = pneg %p4847_p8  ;;  %s219_s10 = sshll.u32 %s4757_s9, 4  ;;  %s4862_s10 = int_to_ptr.vmem [resolvable:$true] %s219_s10 }
  0x18   : > { %s4864_s12 = sshll.u32 %s4758_s11, 4  ;;  %s5528_s2 = sld [smem:[#allocation21_spill]]  ;;  %s233_s12 = int_to_ptr.vmem [resolvable:$true] %s4864_s12 }
  0x19   : > { %p4858_p11 = pnand %p4357_p9, %p5514_p1 }
  0x1b   : > { %p4874_p13 = pneg %p4858_p11 }
  0x1e   : > { %s4500_s15 = scalar_lea.hbm %s5528_s2, 512 }
  0x1f   : > { %p4501_p12 = scmp.ne.s32.totalorder %s5528_s2, %s4500_s15  ;;  %p4507_p5 = scmp.lt.u32.totalorder %s4500_s15, %s5528_s2 }
  0x21   : > { %p4503_p0 = pnand %p4874_p13, %p4501_p12 }
  0x23   : > { %p4504_p3 = pneg %p4503_p0 }
  0x25   : > { %p4509_p7 = pnand %p4507_p5, %p4504_p3 }
  0x27   : > { %4512 = shalt.err (!%p4509_p7)
}
  0x28   : > { %s4513_s26 = scalar_lea.vmem %s4851_s7, 512  ;;  %p4521_p2 = scmp.lt.s32.totalorder %s4851_s7, %s4851_s7 }
  0x29   : > { %p4514_p9 = scmp.ne.s32.totalorder %s4851_s7, %s4513_s26  ;;  %p4522_p6 = scmp.lt.s32.totalorder %s4513_s26, %s4513_s26 }
  0x2b   : > { %p4516_p10 = pnand %p4514_p9, %p4874_p13  ;;  %p4523_p12 = por %p4522_p6, %p4521_p2 }
  0x2d   : > { %p4517_p1 = pneg %p4516_p10 }
  0x2f   : > { %p4524_p0 = pnand %p4523_p12, %p4517_p1 }
  0x31   : > { %4527 = shalt.err (!%p4524_p0)
}
  0x32   : > { %s5517_s30 = smov 128   ;;  %s5519_s9 = smov 8  }
  0x33   : > { %4360 = dma.hbm_to_vmem [thread:$0]  (!%p4858_p11), %s5528_s2, 512, %s4851_s7, [#allocation6], %s5517_s30, %s5517_s30, %s5519_s9  }
  0x34   : > { %s5530_s3 = sld [smem:[#allocation22_spill]] }
  0x3a   : > { %s4528_s16 = scalar_lea.hbm %s5530_s3, 512 }
  0x3b   : > { %p4529_p1 = scmp.ne.s32.totalorder %s5530_s3, %s4528_s16  ;;  %p4535_p10 = scmp.lt.u32.totalorder %s4528_s16, %s5530_s3 }
  0x3d   : > { %p4531_p2 = pnand %p4529_p1, %p4874_p13 }
  0x3f   : > { %p4532_p6 = pneg %p4531_p2 }
  0x41   : > { %p4537_p3 = pnand %p4535_p10, %p4532_p6 }
  0x43   : > { %4540 = shalt.err (!%p4537_p3)
}
  0x44   : > { %s4541_s7 = scalar_lea.vmem %s4862_s10, 512  ;;  %p4549_p12 = scmp.lt.s32.totalorder %s4862_s10, %s4862_s10 }
  0x45   : > { %p4542_p5 = scmp.ne.s32.totalorder %s4862_s10, %s4541_s7  ;;  %p4550_p0 = scmp.lt.s32.totalorder %s4541_s7, %s4541_s7 }
  0x47   : > { %p4544_p7 = pnand %p4542_p5, %p4874_p13  ;;  %p4551_p1 = por %p4550_p0, %p4549_p12 }
  0x49   : > { %p4545_p9 = pneg %p4544_p7 }
  0x4b   : > { %p4552_p2 = pnand %p4551_p1, %p4545_p9 }
  0x4d   : > { %4555 = shalt.err (!%p4552_p2)
}
  0x4e   : > { %4363 = dma.hbm_to_vmem [thread:$0]  (!%p4858_p11), %s5530_s3, 512, %s4862_s10, [#allocation9], %s5517_s30, %s5517_s30, %s5519_s9  }
  0x4f   : > { %s4556_s16 = scalar_lea.hbm %s5511_s4, 512 }
  0x50   : > { %p4557_p6 = scmp.ne.s32.totalorder %s5511_s4, %s4556_s16  ;;  %p4563_p5 = scmp.lt.u32.totalorder %s4556_s16, %s5511_s4 }
  0x52   : > { %p4559_p10 = pnand %p4557_p6, %p4874_p13 }
  0x54   : > { %p4560_p3 = pneg %p4559_p10 }
  0x56   : > { %p4565_p7 = pnand %p4563_p5, %p4560_p3 }
  0x58   : > { %4568 = shalt.err (!%p4565_p7)
}
  0x59   : > { %s4569_s7 = scalar_lea.vmem %s233_s12, 512  ;;  %p4577_p1 = scmp.lt.s32.totalorder %s233_s12, %s233_s12 }
  0x5a   : > { %p4570_p9 = scmp.ne.s32.totalorder %s233_s12, %s4569_s7  ;;  %p4578_p2 = scmp.lt.s32.totalorder %s4569_s7, %s4569_s7 }
  0x5c   : > { %p4572_p12 = pnand %p4570_p9, %p4874_p13  ;;  %p4579_p4 = por %p4578_p2, %p4577_p1 }
  0x5e   : > { %p4573_p0 = pneg %p4572_p12 }
  0x60   : > { %p4580_p8 = pnand %p4579_p4, %p4573_p0 }
  0x62   : > { %4583 = shalt.err (!%p4580_p8)
}
  0x63   : > { %4366 = dma.hbm_to_vmem [thread:$0]  (!%p4858_p11), %s5511_s4, 512, %s233_s12, [#allocation9], %s5517_s30, %s5517_s30, %s5519_s9  }
  0x64   : > { %s4761_s13 = smov [#allocation11]   ;;  %s4584_s17 = scalar_lea.hbm %s5512_s5, 512 }
  0x65   : > { %s245_s14 = sshll.u32 %s4761_s13, 4  ;;  %p4585_p4 = scmp.ne.s32.totalorder %s5512_s5, %s4584_s17  ;;  %s246_s14 = int_to_ptr.vmem [resolvable:$true] %s245_s14 }
  0x66   : > { %p4591_p10 = scmp.lt.u32.totalorder %s4584_s17, %s5512_s5 }
  0x67   : > { %p4587_p8 = pnand %p4585_p4, %p4874_p13 }
  0x69   : > { %p4588_p6 = pneg %p4587_p8 }
  0x6b   : > { %p4593_p3 = pnand %p4591_p10, %p4588_p6 }
  0x6d   : > { %4596 = shalt.err (!%p4593_p3)
}
  0x6e   : > { %s4597_s12 = scalar_lea.vmem %s246_s14, 512  ;;  %p4605_p12 = scmp.lt.s32.totalorder %s246_s14, %s246_s14 }
  0x6f   : > { %p4598_p5 = scmp.ne.s32.totalorder %s246_s14, %s4597_s12  ;;  %p4606_p0 = scmp.lt.s32.totalorder %s4597_s12, %s4597_s12 }
  0x71   : > { %p4600_p7 = pnand %p4598_p5, %p4874_p13  ;;  %p4607_p1 = por %p4606_p0, %p4605_p12 }
  0x73   : > { %p4601_p9 = pneg %p4600_p7 }
  0x75   : > { %p4608_p2 = pnand %p4607_p1, %p4601_p9 }
  0x77   : > { %4611 = shalt.err (!%p4608_p2)
}
  0x78   : > { %4369 = dma.hbm_to_vmem [thread:$0]  (!%p4858_p11), %s5512_s5, 512, %s246_s14, [#allocation12], %s5517_s30, %s5517_s30, %s5519_s9  }
  0x79   : > { %s4968_s18 = sadd.s32 1, %s4754_s24   ;;  %s34_s8 = sadd.s32 1, %s4750_s23 }
  0x7a   : > { %s31_s13 = ssub.s32 %s4754_s24, %s4968_s18  ;;  %p41_p13 = scmp.ne.s32.totalorder %s4750_s23, %s4746_s22 }
  0x7b   : > { %p32_p4 = scmp.eq.s32.totalorder %s31_s13, 0  ;;  %p42_p8 = scmp.eq.s32.totalorder %s4754_s24, 0 }
  0x7c   : > { %p5531_p6 = scmp.eq.s32.totalorder %s4828_s25, 1  ;;  %p4385_p3 = scmp.lt.s32.totalorder %s4754_s24, 2 }
  0x7d   : > { %s4984_s16 = scalar_select %p32_p4, %s4750_s23, %s34_s8  }
  0x7e   : > { %p4978_p10 = por %p5531_p6, %p41_p13  ;;  %p43_p5 = por %p42_p8, %p41_p13 }
  0x7f   : > { %s259_s17 = sand.u32 1, %s4750_s23   ;;  %s3950_s14 = sshll.u32 %s4754_s24, 9 }
  0x80   : > { %s3855_s19 = sshll.u32 %s259_s17, 5  ;;  %s5533_s0 = sld [smem:[#allocation20_spill]] }
  0x81   : > { %s263_s12 = scalar_lea.vmem [#allocation2], %s3855_s19  ;;  %p4995_p11 = pnand %p4385_p3, %p43_p5 }
  0x82   : > { %s270_s10 = sshll.u32 %s263_s12, 4  ;;  %s5002_s20 = scalar_lea.hbm %s5508_s1, %s3950_s14  ;;  %s4993_s10 = int_to_ptr.vmem [resolvable:$true] %s270_s10 }
  0x83   : > { %s284_s26 = scalar_lea.vmem [#allocation5], %s3855_s19  ;;  %s5006_s9 = scalar_lea.sflag [#allocation3], %s259_s17 }
  0x84   : > { %s5004_s30 = sshll.u32 %s284_s26, 4  ;;  %p4614_p9 = pneg %p4995_p11  ;;  %s5038_s30 = int_to_ptr.vmem [resolvable:$true] %s5004_s30 }
  0x86   : > { %s4991_s7 = scalar_lea.hbm %s5533_s0, %s3950_s14  ;;  %s4617_s8 = scalar_lea.hbm %s5533_s0, 1024 }
  0x87   : > { %s4612_s12 = scalar_lea.hbm %s4991_s7, 512  ;;  %p4618_p1 = scmp.lt.u32.totalorder %s4991_s7, %s5533_s0 }
  0x88   : > { %p4613_p7 = scmp.ne.s32.totalorder %s4991_s7, %s4612_s12  ;;  %p4619_p2 = scmp.lt.u32.totalorder %s4617_s8, %s4612_s12 }
  0x89   : > { %p4621_p4 = scmp.lt.u32.totalorder %s4612_s12, %s4991_s7 }
  0x8a   : > { %p4615_p12 = pnand %p4614_p9, %p4613_p7  ;;  %p4620_p13 = por %p4619_p2, %p4618_p1 }
  0x8c   : > { %p4616_p0 = pneg %p4615_p12  ;;  %p4622_p8 = por %p4621_p4, %p4620_p13 }
  0x8e   : > { %p4623_p6 = pnand %p4622_p8, %p4616_p0 }
  0x90   : > { %4626 = shalt.err (!%p4623_p6)
}
  0x91   : > { %s4627_s17 = scalar_lea.vmem %s4993_s10, 512  ;;  %s4762_s2 = smov [#allocation2]  }
  0x92   : > { %p4628_p3 = scmp.ne.s32.totalorder %s4993_s10, %s4627_s17  ;;  %s4632_s3 = sshll.u32 %s4762_s2, 4  ;;  %s4633_s3 = int_to_ptr.vmem [resolvable:$false] %s4632_s3 }
  0x93   : > { %s4634_s19 = scalar_lea.vmem %s4633_s3, 1024  ;;  %p4635_p12 = scmp.lt.s32.totalorder %s4993_s10, %s4633_s3 }
  0x94   : > { %p4630_p5 = pnand %p4628_p3, %p4614_p9  ;;  %p4636_p1 = scmp.lt.s32.totalorder %s4634_s19, %s4627_s17 }
  0x96   : > { %p4631_p7 = pneg %p4630_p5  ;;  %p4637_p2 = por %p4636_p1, %p4635_p12 }
  0x98   : > { %p4638_p13 = pnand %p4637_p2, %p4631_p7 }
  0x9a   : > { %4641 = shalt.err (!%p4638_p13)
}
  0x9b   : > { %s5535_s26 = smov 8   ;;  %s5536_s12 = smov 128  }
  0x9c   : > { %4373 = dma.hbm_to_vmem [thread:$0]  (!%p4995_p11), %s4991_s7, 512, %s4993_s10, %s5006_s9, %s5536_s12, %s5536_s12, %s5535_s26  }
  0x9d   : > { %s280_s8 = sand.u32 1, %s4754_s24   ;;  %s4642_s14 = scalar_lea.hbm %s5002_s20, 512 }
  0x9e   : > { %s5041_s13 = scalar_lea.sflag [#allocation6], %s280_s8  ;;  %p4643_p0 = scmp.ne.s32.totalorder %s5002_s20, %s4642_s14 }
  0x9f   : > { %s4647_s3 = scalar_lea.hbm %s5508_s1, 1024  ;;  %p4648_p6 = scmp.lt.u32.totalorder %s5002_s20, %s5508_s1 }
  0xa0   : > { %p4645_p4 = pnand %p4643_p0, %p4614_p9  ;;  %p4649_p3 = scmp.lt.u32.totalorder %s4647_s3, %s4642_s14 }
  0xa1   : > { %p4651_p7 = scmp.lt.u32.totalorder %s4642_s14, %s5002_s20 }
  0xa2   : > { %p4646_p8 = pneg %p4645_p4  ;;  %p4650_p5 = por %p4649_p3, %p4648_p6 }
  0xa4   : > { %p4652_p12 = por %p4651_p7, %p4650_p5 }
  0xa6   : > { %p4653_p1 = pnand %p4652_p12, %p4646_p8 }
  0xa8   : > { %4656 = shalt.err (!%p4653_p1)
}
  0xa9   : > { %s4657_s9 = scalar_lea.vmem %s5038_s30, 512  ;;  %s4763_s7 = smov [#allocation5]  }
  0xaa   : > { %p4658_p2 = scmp.ne.s32.totalorder %s5038_s30, %s4657_s9  ;;  %s4662_s10 = sshll.u32 %s4763_s7, 4  ;;  %s4663_s10 = int_to_ptr.vmem [resolvable:$false] %s4662_s10 }
  0xab   : > { %s4664_s0 = scalar_lea.vmem %s4663_s10, 1024  ;;  %p4665_p4 = scmp.lt.s32.totalorder %s5038_s30, %s4663_s10 }
  0xac   : > { %p4660_p13 = pnand %p4658_p2, %p4614_p9  ;;  %p4666_p6 = scmp.lt.s32.totalorder %s4664_s0, %s4657_s9 }
  0xae   : > { %p4661_p0 = pneg %p4660_p13  ;;  %p4667_p3 = por %p4666_p6, %p4665_p4 }
  0xb0   : > { %p4668_p5 = pnand %p4667_p3, %p4661_p0 }
  0xb2   : > { %4671 = shalt.err (!%p4668_p5)
}
  0xb3   : > { %4376 = dma.hbm_to_vmem [thread:$0]  (!%p4995_p11), %s5002_s20, 512, %s5038_s30, %s5041_s13, %s5536_s12, %s5536_s12, %s5535_s26  }
  0xb4   : > { %p5537_p9 = scmp.ne.s32.totalorder %s5526_s29, 0 }
  0xb5   : > { %s5073_s8 = sand.u32 (!%p5537_p9), 1, %s4746_s22   ;;  %p5538_p8 = scmp.ne.s32.totalorder (!%p5537_p9), %s5524_s27, 0 }
  0xb6   : > { %303 = sbr.rel (%p5537_p9) target bundleno = 3281 (0xcd1), region = 44  ;;  %s5076_s14 = sshll.u32 (!%p5537_p9), %s5073_s8, 5 }
  0xb7   : > { %s306_s11 = scalar_lea.sflag (!%p5537_p9), [#allocation3], %s5073_s8  ;;  %s5080_s17 = scalar_lea.vmem (!%p5537_p9), [#allocation2], %s5076_s14 }
  0xbd   : > { %4717 = dma.done.wait (%p5538_p8), %s306_s11, 512  }
  0xbe   : > { %4719 = vsyncadd (%p5538_p8), %s306_s11, 4294966784  ;;  %s314_s29 = sand.u32 1, %s4828_s25   ;;  %s5088_s20 = scalar_lea.vmem [#allocation5], %s5076_s14 }
  0xbf   : > { %s315_s30 = scalar_lea.sflag [#allocation6], %s314_s29 }
  0xc0   : > { %4721 = dma.done.wait (%p5538_p8), %s315_s30, 512  }
  0xc1   : > { %4723 = vsyncadd (%p5538_p8), %s315_s30, 4294966784  ;;  %p5539_p11 = scmp.eq.s32.totalorder %s4828_s25, 0 }
  0xc3   : > { %4725 = dma.done.wait (%p5539_p11), [#allocation6], 512   ;;  %p5540_p7 = pmov %p5539_p11 }
  0xc5   : > { %4727 = vsyncadd (%p5540_p7), [#allocation6], 4294966784  ;;  %p5541_p12 = pmov %p5540_p7 }
  0xc6   : > { %p5542_p1 = pmov %p5540_p7 }
  0xc7   : > { %4729 = dma.done.wait (%p5541_p12), [#allocation9], 1024  }
  0xc8   : > { %4731 = vsyncadd (%p5542_p1), [#allocation9], 4294966272  ;;  %p5543_p2 = pmov %p5542_p1 }
  0xc9   : > { %p5544_p13 = pmov %p5542_p1 }
  0xca   : > { %4733 = dma.done.wait (%p5543_p2), [#allocation12], 512  }
  0xcb   : > { %4735 = vsyncadd (%p5544_p13), [#allocation12], 4294966784  ;;  %v481_v0 = vld [vmem:[#allocation8] sm:$0xff]  ;;  %v482_v1 = vld [vmem:[#allocation8 + $0x8] sm:$0xff]  ;;  %vm383_vm0 = vcmask 261120   ;;  %v4764_v26 = vmov 0.0  }
  0xcc   : > { %v379_v2 = vld [vmem:[#allocation7] sm:$0xff]  ;;  %v4303_v3 = vpack.c.bf16 %v482_v1, %v481_v0  ;;  %v380_v4 = vld [vmem:[#allocation7 + $0x8] sm:$0xff]  ;;  %v483_v5 = vld [vmem:[#allocation8 + $0x10] sm:$0xff]  ;;  %vm4765_vm1 = vmmov 0   ;;  %vm671_vm2 = vcmask 64512   ;;  %s4766_s27 = smov 120  }
  0xcd   : > { %v484_v6 = vld [vmem:[#allocation8 + $0x18] sm:$0xff]  ;;  %v4295_v7 = vpack.c.bf16 %v380_v4, %v379_v2  ;;  %v381_v9 = vld [vmem:[#allocation7 + $0x10] sm:$0xff]  ;;  %v375_v11 = vld [vmem:[%s5088_s20] sm:$0xff]  ;;  %s4767_s26 = smov 112   ;;  %s4768_s12 = smov 104  }
  0xce   : > { %v4307_v8 = vpack.c.bf16 %v484_v6, %v483_v5  ;;  %v382_v10 = vld [vmem:[#allocation7 + $0x18] sm:$0xff]  ;;  %4304 = vmatprep.subr.bf16.mxu1 %v4303_v3  ;;  %4083 = vmatprep.mubr.msk.f32.mxu1 %vm383_vm0, %v375_v11  ;;  %v371_v13 = vld [vmem:[%s5080_s17] sm:$0xff]  ;;  %v583_v15 = vld [vmem:[#allocation10 + $0x8] sm:$0xff]  ;;  %s367_s13 = scalar_lea.vmem [#allocation13], %s5076_s14  ;;  %s3952_s3 = sshll.u32 %s4828_s25, 9 }
  0xcf   : > { %v4299_v12 = vpack.c.bf16 %v382_v10, %v381_v9  ;;  %4306 = vmatpush3.bf16.msra.mxu1 %v4303_v3  ;;  %4296 = vmatprep.subr.bf16.mxu0 %v4295_v7  ;;  %v582_v14 = vld [vmem:[#allocation10] sm:$0xff]  ;;  %v584_v17 = vld [vmem:[#allocation10 + $0x10] sm:$0xff]  ;;  %v585_v18 = vld [vmem:[#allocation10 + $0x18] sm:$0xff]  ;;  %s3714_s2 = sshll.u32 %s367_s13, 4  ;;  %s5461_s7 = scalar_lea.hbm %s5513_s6, %s3952_s3  ;;  %s5456_s2 = int_to_ptr.vmem [resolvable:$true] %s3714_s2 }
  0xd0   : > { %4298 = vmatpush3.bf16.msra.mxu0 %v4295_v7  ;;  %4308 = vmatprep.subr.bf16.mxu1 %v4307_v8  ;;  %v4311_v16 = vpack.c.bf16 %v583_v15, %v582_v14  ;;  %v376_v19 = vld [vmem:[%s5088_s20 + $0x8] sm:$0xff]  ;;  %v377_v21 = vld [vmem:[%s5088_s20 + $0x10] sm:$0xff]  ;;  %v4315_v23 = vpack.c.bf16 %v585_v18, %v584_v17  ;;  %v378_v24 = vld [vmem:[%s5088_s20 + $0x18] sm:$0xff]  ;;  %s3701_s10 = scalar_lea.sflag [#allocation4], %s5073_s8  ;;  %s4672_s0 = scalar_lea.vmem %s5456_s2, 512 }
  0xd1   : > { %4300 = vmatprep.subr.bf16.mxu0 %v4299_v12  ;;  %4069 = vmatprep.mubr.msk.f32.mxu0 %vm383_vm0, %v371_v13  ;;  %v372_v20 = vld [vmem:[%s5080_s17 + $0x8] sm:$0xff]  ;;  %v373_v22 = vld [vmem:[%s5080_s17 + $0x10] sm:$0xff]  ;;  %v374_v25 = vld [vmem:[%s5080_s17 + $0x18] sm:$0xff]  ;;  %p4673_p0 = scmp.ne.s32.totalorder %s5456_s2, %s4672_s0  ;;  %s4769_s25 = smov [#allocation13]  }
  0xd2   : > { %s4676_s14 = sshll.u32 %s4769_s25, 4  ;;  %s4677_s14 = int_to_ptr.vmem [resolvable:$false] %s4676_s14 }
  0xd3   : > { %4310 = vmatpush3.bf16.msra.mxu1 %v4307_v8  ;;  %p4674_p4 = pnand %p4673_p0, %p4978_p10  ;;  %s4678_s11 = scalar_lea.vmem %s4677_s14, 1024 }
  0xd4   : > { %4302 = vmatpush3.bf16.msra.mxu0 %v4299_v12  ;;  %4319 = vmatprep.subr.bf16.mxu1 %v4311_v16  ;;  %p4679_p3 = scmp.lt.s32.totalorder %s5456_s2, %s4677_s14  ;;  %p4680_p5 = scmp.lt.s32.totalorder %s4678_s11, %s4672_s0 }
  0xd5   : > { %4312 = vmatprep.subr.bf16.mxu0 %v4311_v16  ;;  %p4675_p6 = pneg %p4674_p4 }
  0xd6   : > { %4084 = vmatmul.mubr.msk.f32.vlgmr.msra.gmra.mrb[0].mxu1 %vm383_vm0, %v376_v19  ;;  %p4681_p9 = por %p4680_p5, %p4679_p3 }
  0xd7   : > { %4070 = vmatmul.mubr.msk.f32.vlgmr.msra.gmra.mrb[0].mxu0 %vm383_vm0, %v372_v20  ;;  %4086 = vmatprep.mubr.msk.f32.mxu1 %vm383_vm0, %v377_v21 }
  0xd8   : > { %4072 = vmatprep.mubr.msk.f32.mxu0 %vm383_vm0, %v373_v22  ;;  %4321 = vmatpush3.bf16.msra.mxu1 %v4311_v16  ;;  %p4682_p8 = pnand %p4681_p9, %p4675_p6 }
  0xd9   : > { %4320 = vmatprep.subr.bf16.mxu1 %v4315_v23  ;;  %4314 = vmatpush3.bf16.msra.mxu0 %v4311_v16 }
  0xda   : > { %4087 = vmatmul.mubr.msk.f32.gmra.mrb[2].mxu1 %vm383_vm0, %v378_v24  ;;  %4316 = vmatprep.subr.bf16.mxu0 %v4315_v23 }
  0xdb   : > { %4073 = vmatmul.mubr.msk.f32.gmra.mrb[2].mxu0 %vm383_vm0, %v374_v25  ;;  %4100 = vmatprep.mubr.msk.f32.mxu1 %vm383_vm0, %v377_v21 }
  0xdc   : > { %4322 = vmatpush3.bf16.msra.mxu1 %v4315_v23  ;;  %4097 = vmatprep.mubr.msk.f32.mxu0 %vm383_vm0, %v375_v11 }
  0xdd   : > { %4318 = vmatpush3.bf16.msra.mxu0 %v4315_v23  ;;  %4103 = vmatprep.subr.mxu1 %v4764_v26 }
  0xde   : > { %4113 = vmatprep.subr.mxu0 %v4764_v26 }
  0xdf   : > { %4101 = vmatmul.mubr.msk.f32.vlgmr.msra.gmra.mrb[4].mxu1 %vm383_vm0, %v378_v24 }
  0xe0   : > { %4098 = vmatmul.mubr.msk.f32.vlgmr.msra.gmra.mrb[4].mxu0 %vm383_vm0, %v376_v19  ;;  %4105 = vmatprep.mubr.msk.f32.mxu1 %vm4765_vm1, %v4764_v26 }
  0xe1   : > { %4115 = vmatprep.mubr.msk.f32.mxu0 %vm4765_vm1, %v4764_v26 }
 0x1a9   : > { %v5132_v27 = vpop.f32.mrb[0].mxu1 }
 0x1aa   : > { %v5134_v28 = vpop.f32.mrb[1].mxu1  ;;  %v5136_v29 = vpop.f32.mrb[0].mxu0 }
 0x1ab   : > { %4104 = vmatpush3.xpose.msk.msra.mxu1 %vm671_vm2, %v5134_v28  ;;  %v5140_v30 = vpop.f32.mrb[1].mxu0  ;;  %1391 = vrot.lane.b32.xlu1 %v5136_v29, %s4766_s27 }
 0x1ac   : > { %4108 = vmatprep.subr.mxu1 %v4764_v26 }
 0x1ad   : > { %v5145_v31 = vpop.f32.mrb[2].mxu1 }
 0x1ae   : > { %4106 = vmatmul.mubr.msk.f32.vlgmr.msra.gmra.mrb[6].mxu1 %vm671_vm2, %v5140_v30  ;;  %v5149_v32 = vpop.f32.mrb[3].mxu1  ;;  %v5151_v33 = vpop.f32.mrb[2].mxu0 }
 0x1af   : > { %4109 = vmatpush3.xpose.msk.msra.mxu1 %vm671_vm2, %v5132_v27  ;;  %4110 = vmatprep.mubr.msk.f32.mxu1 %vm4765_vm1, %v4764_v26  ;;  %v5157_v34 = vpop.f32.mrb[3].mxu0 }
 0x1b0   : > { %4118 = vmatprep.subr.mxu1 %v4764_v26  ;;  %4114 = vmatpush3.xpose.msk.msra.mxu0 %vm671_vm2, %v5149_v32 }
 0x1b1   : > { %4123 = vmatprep.subr.mxu0 %v4764_v26 }
 0x1b2   : > { %4111 = vmatmul.mubr.msk.f32.vlgmr.msra.gmra.mrb[8].mxu1 %vm671_vm2, %v5136_v29  ;;  %v5165_v35 = vpop.f32.mrb[4].mxu1 }
 0x1b3   : > { %4119 = vmatpush3.xpose.msk.msra.mxu1 %vm671_vm2, %v5145_v31  ;;  %4120 = vmatprep.mubr.msk.f32.mxu1 %vm4765_vm1, %v4764_v26  ;;  %v5171_v36 = vpop.f32.mrb[5].mxu1  ;;  %v5182_v37 = vpop.f32.mrb[4].mxu0 }
 0x1b4   : > { %4116 = vmatmul.mubr.msk.f32.vlgmr.msra.gmra.mrb[6].mxu0 %vm671_vm2, %v5157_v34  ;;  %4128 = vmatprep.subr.mxu1 %v4764_v26  ;;  %v5184_v38 = vpop.f32.mrb[5].mxu0 }
 0x1b5   : > { %4125 = vmatprep.mubr.msk.f32.mxu0 %vm4765_vm1, %v4764_v26  ;;  %4124 = vmatpush3.msra.mxu0 %v5184_v38 }
 0x1b6   : > { %4121 = vmatmul.mubr.msk.f32.vlgmr.msra.gmra.mrb[10].mxu1 %vm671_vm2, %v5151_v33  ;;  %4133 = vmatprep.subr.mxu0 %v4764_v26 }
 0x1b7   : > { %4130 = vmatprep.mubr.msk.f32.mxu1 %vm4765_vm1, %v4764_v26  ;;  %4129 = vmatpush3.msra.mxu1 %v5182_v37 }
 0x1b8   : > { %4138 = vmatprep.subr.mxu1 %v4764_v26 }
 0x21d   : > { %v1392_v3 = vpop.permute.xlu1 %1391 }
 0x281   : > { %v744_v39 = vpop.f32.mrb[6].mxu1 }
 0x282   : > { %v4107_v40 = vpop.f32.mrb[7].mxu1  ;;  %v976_v49 = vsel %vm671_vm2, %v744_v39, -inf }
 0x285   : > { %v820_v41 = vpop.f32.mrb[8].mxu1 }
 0x286   : > { %v4112_v42 = vpop.f32.mrb[9].mxu1  ;;  %v979_v43 = vsel %vm671_vm2, %v820_v41, -inf }
 0x287   : > { %980 = vmax.xlane.f32.xlu0 %v979_v43  ;;  %v5191_v44 = vpop.f32.mrb[6].mxu0 }
 0x288   : > { %v4117_v45 = vpop.f32.mrb[7].mxu0  ;;  %v982_v2 = vsel %vm671_vm2, %v5191_v44, -inf }
 0x289   : > { %v972_v46 = vpop.f32.mrb[10].mxu1 }
 0x28a   : > { %v985_v47 = vsel %vm671_vm2, %v972_v46, -inf  ;;  %v4122_v48 = vpop.f32.mrb[11].mxu1 }
 0x28b   : > { %986 = vmax.xlane.f32.xlu0 %v985_v47 }
 0x2a1   : > { %1393 = vrot.lane.b32.xlu0 %v5132_v27, %s4766_s27 }
 0x2c0   : > { %977 = vmax.xlane.f32.xlu0 %v976_v49 }
 0x314   : > { %v981_v50 = vpop.xlane.xlu0 %980 }
 0x315   : > { %v989_v51 = vsub.f32 %v820_v41, %v981_v50 }
 0x317   : > { %v994_v52 = vmul.f32 1.442695, %v989_v51 }
 0x318   : > { %v987_v53 = vpop.xlane.xlu0 %986 }
 0x319   : > { %4436 = vpow2.f32 %v994_v52  ;;  %v991_v54 = vsub.f32 %v972_v46, %v987_v53 }
 0x31b   : > { %v998_v55 = vmul.f32 1.442695, %v991_v54 }
 0x31c   : > { %v1394_v60 = vpop.permute.xlu0 %1393 }
 0x31d   : > { %4438 = vpow2.f32 %v998_v55 }
 0x323   : > { %v4437_v56 = vpop.eup %4436 }
 0x324   : > { %v1003_v57 = vsel %vm671_vm2, %v4437_v56, 0.0 }
 0x325   : > { %1004 = vadd.xlane.f32.xlu1 %v1003_v57 }
 0x327   : > { %v4439_v58 = vpop.eup %4438 }
 0x328   : > { %v1009_v59 = vsel %vm671_vm2, %v4439_v58, 0.0 }
 0x329   : > { %1010 = vadd.xlane.f32.xlu1 %v1009_v59 }
 0x33a   : > { %1549 = vrot.lane.b32.xlu1 %v5145_v31, %s4766_s27 }
 0x33e   : > { %1547 = vrot.lane.b32.xlu1 %v5151_v33, %s4766_s27 }
 0x34d   : > { %v978_v61 = vpop.xlane.xlu0 %977 }
 0x34e   : > { %v988_v62 = vsub.f32 %v744_v39, %v978_v61 }
 0x350   : > { %v992_v63 = vmul.f32 1.442695, %v988_v62 }
 0x352   : > { %4440 = vpow2.f32 %v992_v63 }
 0x35c   : > { %v4441_v0 = vpop.eup %4440 }
 0x35d   : > { %v1000_v1 = vsel %vm671_vm2, %v4441_v0, 0.0 }
 0x35e   : > { %1001 = vadd.xlane.f32.xlu0 %v1000_v1 }
 0x362   : > { %983 = vmax.xlane.f32.xlu1 %v982_v2 }
 0x373   : > { %1313 = vrot.lane.b32.xlu1 %v5140_v30, %s4766_s27 }
 0x377   : > { %1471 = vrot.lane.b32.xlu1 %v5149_v32, %s4766_s27 }
 0x37b   : > { %1469 = vrot.lane.b32.xlu1 %v5157_v34, %s4766_s27 }
 0x3b2   : > { %v1005_v4 = vpop.xlane.xlu1 %1004 }
 0x3b3   : > { %4442 = vrcp.f32 %v1005_v4 }
 0x3b6   : > { %v1011_v5 = vpop.xlane.xlu1 %1010 }
 0x3b7   : > { %4444 = vrcp.f32 %v1011_v5 }
 0x3ba   : > { %v1550_v10 = vpop.permute.xlu1 %1549 }
 0x3bd   : > { %v4443_v6 = vpop.eup %4442 }
 0x3be   : > { %v1017_v7 = vmul.f32 %v4443_v6, %v4437_v56  ;;  %v1548_v11 = vpop.permute.xlu1 %1547 }
 0x3c0   : > { %4131 = vmatmul.mubr.msk.f32.vlgmr.msra.gmra.mrb[12].mxu1 %vm671_vm2, %v1017_v7 }
 0x3c1   : > { %v4445_v8 = vpop.eup %4444  ;;  %4139 = vmatpush3.msra.mxu1 %v5165_v35  ;;  %4140 = vmatprep.mubr.msk.f32.mxu1 %vm4765_vm1, %v4764_v26 }
 0x3c2   : > { %v1019_v9 = vmul.f32 %v4445_v8, %v4439_v58  ;;  %4148 = vmatprep.subr.mxu1 %v4764_v26 }
 0x3c4   : > { %4141 = vmatmul.mubr.msk.f32.vlgmr.msra.gmra.mrb[14].mxu1 %vm671_vm2, %v1019_v9 }
 0x3c5   : > { %4150 = vmatprep.mubr.msk.f32.mxu1 %vm4765_vm1, %v4764_v26 }
 0x3c8   : > { %4149 = vmatpush3.xpose.msk.msra.mxu1 %vm671_vm2, %v1394_v60 }
 0x3c9   : > { %4158 = vmatprep.subr.mxu1 %v4764_v26 }
 0x3cb   : > { %4151 = vmatmul.mubr.msk.f32.vlgmr.msra.gmra.mrb[16].mxu1 %vm671_vm2, %v1392_v3 }
 0x3cc   : > { %4159 = vmatpush3.xpose.msk.msra.mxu1 %vm671_vm2, %v1550_v10  ;;  %4160 = vmatprep.mubr.msk.f32.mxu1 %vm4765_vm1, %v4764_v26 }
 0x3cd   : > { %4168 = vmatprep.subr.mxu1 %v4764_v26 }
 0x3cf   : > { %4161 = vmatmul.mubr.msk.f32.vlgmr.msra.gmra.mrb[18].mxu1 %vm671_vm2, %v1548_v11 }
 0x3d0   : > { %4170 = vmatprep.mubr.msk.f32.mxu1 %vm4765_vm1, %v4764_v26 }
 0x3eb   : > { %v1002_v12 = vpop.xlane.xlu0 %1001 }
 0x3ec   : > { %4446 = vrcp.f32 %v1002_v12 }
 0x3ef   : > { %v984_v13 = vpop.xlane.xlu1 %983 }
 0x3f0   : > { %v990_v14 = vsub.f32 %v5191_v44, %v984_v13 }
 0x3f2   : > { %v996_v15 = vmul.f32 1.442695, %v990_v14 }
 0x3f3   : > { %v1314_v23 = vpop.permute.xlu1 %1313 }
 0x3f4   : > { %4448 = vpow2.f32 %v996_v15 }
 0x3f6   : > { %v4447_v16 = vpop.eup %4446 }
 0x3f7   : > { %v1016_v17 = vmul.f32 %v4447_v16, %v4441_v0  ;;  %v1472_v42 = vpop.permute.xlu1 %1471 }
 0x3f9   : > { %4126 = vmatmul.mubr.msk.f32.vlgmr.msra.gmra.mrb[8].mxu0 %vm671_vm2, %v1016_v17 }
 0x3fa   : > { %4134 = vmatpush3.msra.mxu0 %v5171_v36  ;;  %4135 = vmatprep.mubr.msk.f32.mxu0 %vm4765_vm1, %v4764_v26 }
 0x3fb   : > { %4143 = vmatprep.subr.mxu0 %v4764_v26  ;;  %v1470_v46 = vpop.permute.xlu1 %1469 }
 0x3fe   : > { %v4449_v18 = vpop.eup %4448 }
 0x3ff   : > { %v1006_v19 = vsel %vm671_vm2, %v4449_v18, 0.0 }
 0x400   : > { %1007 = vadd.xlane.f32.xlu0 %v1006_v19 }
 0x416   : > { %1315 = vrot.lane.b32.xlu0 %v5134_v28, %s4766_s27 }
 0x48d   : > { %v1008_v20 = vpop.xlane.xlu0 %1007 }
 0x48e   : > { %4450 = vrcp.f32 %v1008_v20 }
 0x491   : > { %v1316_v41 = vpop.permute.xlu0 %1315 }
 0x493   : > { %v5239_v21 = vpop.f32.mrb[12].mxu1 }
 0x494   : > { %v4132_v22 = vpop.f32.mrb[13].mxu1 }
 0x497   : > { %v5241_v24 = vpop.f32.mrb[14].mxu1 }
 0x498   : > { %v4451_v25 = vpop.eup %4450  ;;  %v4142_v39 = vpop.f32.mrb[15].mxu1 }
 0x499   : > { %v1018_v40 = vmul.f32 %v4451_v25, %v4449_v18 }
 0x49b   : > { %4136 = vmatmul.mubr.msk.f32.vlgmr.msra.gmra.mrb[10].mxu0 %vm671_vm2, %v1018_v40 }
 0x49c   : > { %4144 = vmatpush3.xpose.msk.msra.mxu0 %vm671_vm2, %v1316_v41  ;;  %4145 = vmatprep.mubr.msk.f32.mxu0 %vm4765_vm1, %v4764_v26 }
 0x49d   : > { %4153 = vmatprep.subr.mxu0 %v4764_v26 }
 0x49e   : > { %v1465_v43 = vpop.f32.mrb[16].mxu1 }
 0x49f   : > { %v4152_v44 = vpop.f32.mrb[17].mxu1  ;;  %v1628_v45 = vsel %vm671_vm2, %v1465_v43, -inf  ;;  %4146 = vmatmul.mubr.msk.f32.vlgmr.msra.gmra.mrb[12].mxu0 %vm671_vm2, %v1314_v23 }
 0x4a0   : > { %1629 = vmax.xlane.f32.xlu0 %v1628_v45  ;;  %4154 = vmatpush3.xpose.msk.msra.mxu0 %vm671_vm2, %v1472_v42 }
 0x4a1   : > { %4155 = vmatprep.mubr.msk.f32.mxu0 %vm4765_vm1, %v4764_v26  ;;  %4163 = vmatprep.subr.mxu0 %v4764_v26 }
 0x4a2   : > { %v1621_v47 = vpop.f32.mrb[18].mxu1 }
 0x4a3   : > { %v4162_v48 = vpop.f32.mrb[19].mxu1  ;;  %v1634_v49 = vsel %vm671_vm2, %v1621_v47, -inf  ;;  %4156 = vmatmul.mubr.msk.f32.vlgmr.msra.gmra.mrb[14].mxu0 %vm671_vm2, %v1470_v46 }
 0x4a4   : > { %1635 = vmax.xlane.f32.xlu1 %v1634_v49  ;;  %4165 = vmatprep.mubr.msk.f32.mxu0 %vm4765_vm1, %v4764_v26 }
 0x4b5   : > { %1901 = vrot.lane.b32.xlu1 %v5165_v35, %s4766_s27 }
 0x4b9   : > { %2174 = vrot.lane.b32.xlu1 %v5134_v28, %s4767_s26 }
 0x4bd   : > { %2172 = vrot.lane.b32.xlu1 %v5140_v30, %s4767_s26 }
 0x4c1   : > { %2250 = vrot.lane.b32.xlu1 %v5136_v29, %s4767_s26 }
 0x4c5   : > { %2328 = vrot.lane.b32.xlu1 %v5157_v34, %s4767_s26 }
 0x4c9   : > { %2406 = vrot.lane.b32.xlu1 %v5151_v33, %s4767_s26 }
 0x4cc   : > { %v5270_v50 = vpop.f32.mrb[8].mxu0 }
 0x4cd   : > { %v4127_v51 = vpop.f32.mrb[9].mxu0 }
 0x52d   : > { %v1630_v52 = vpop.xlane.xlu0 %1629 }
 0x52e   : > { %v1638_v53 = vsub.f32 %v1465_v43, %v1630_v52 }
 0x530   : > { %v1643_v54 = vmul.f32 1.442695, %v1638_v53 }
 0x531   : > { %v1636_v55 = vpop.xlane.xlu1 %1635 }
 0x532   : > { %4452 = vpow2.f32 %v1643_v54  ;;  %v1640_v56 = vsub.f32 %v1621_v47, %v1636_v55 }
 0x534   : > { %v1647_v57 = vmul.f32 1.442695, %v1640_v56 }
 0x535   : > { %v1902_v8 = vpop.permute.xlu1 %1901 }
 0x536   : > { %4454 = vpow2.f32 %v1647_v57 }
 0x539   : > { %v2175_v11 = vpop.permute.xlu1 %2174 }
 0x53c   : > { %v4453_v58 = vpop.eup %4452 }
 0x53d   : > { %v1652_v59 = vsel %vm671_vm2, %v4453_v58, 0.0  ;;  %v2173_v15 = vpop.permute.xlu1 %2172 }
 0x53e   : > { %1653 = vadd.xlane.f32.xlu0 %v1652_v59 }
 0x540   : > { %v4455_v60 = vpop.eup %4454 }
 0x541   : > { %v1658_v61 = vsel %vm671_vm2, %v4455_v60, 0.0  ;;  %v2251_v17 = vpop.permute.xlu1 %2250 }
 0x542   : > { %1659 = vadd.xlane.f32.xlu0 %v1658_v61 }
 0x545   : > { %v2329_v19 = vpop.permute.xlu1 %2328 }
 0x549   : > { %v2407_v22 = vpop.permute.xlu1 %2406 }
 0x558   : > { %1747 = vrot.lane.b32.xlu0 %v5182_v37, %s4766_s27 }
 0x55c   : > { %2252 = vrot.lane.b32.xlu0 %v5132_v27, %s4767_s26 }
 0x560   : > { %2330 = vrot.lane.b32.xlu0 %v5149_v32, %s4767_s26 }
 0x564   : > { %2408 = vrot.lane.b32.xlu0 %v5145_v31, %s4767_s26 }
 0x56e   : > { %v5282_v62 = vpop.f32.mrb[10].mxu0 }
 0x56f   : > { %v4137_v63 = vpop.f32.mrb[11].mxu0 }
 0x572   : > { %v1387_v0 = vpop.f32.mrb[12].mxu0 }
 0x573   : > { %v4147_v1 = vpop.f32.mrb[13].mxu0  ;;  %v1625_v5 = vsel %vm671_vm2, %v1387_v0, -inf }
 0x576   : > { %v1543_v2 = vpop.f32.mrb[14].mxu0 }
 0x577   : > { %v4157_v3 = vpop.f32.mrb[15].mxu0  ;;  %v1631_v4 = vsel %vm671_vm2, %v1543_v2, -inf }
 0x578   : > { %1632 = vmax.xlane.f32.xlu1 %v1631_v4 }
 0x583   : > { %1626 = vmax.xlane.f32.xlu0 %v1625_v5 }
 0x589   : > { %1824 = vrot.lane.b32.xlu1 %v5171_v36, %s4766_s27 }
 0x5cb   : > { %v1654_v6 = vpop.xlane.xlu0 %1653 }
 0x5cc   : > { %4456 = vrcp.f32 %v1654_v6 }
 0x5cf   : > { %v1660_v7 = vpop.xlane.xlu0 %1659 }
 0x5d0   : > { %4458 = vrcp.f32 %v1660_v7 }
 0x5d3   : > { %v1748_v9 = vpop.permute.xlu0 %1747 }
 0x5d4   : > { %4169 = vmatpush3.msra.mxu1 %v1748_v9  ;;  %v1977_v9 = vld [vmem:[#allocation11 + $0x8] sm:$0xff] }
 0x5d5   : > { %4178 = vmatprep.subr.mxu1 %v4764_v26 }
 0x5d6   : > { %v4457_v10 = vpop.eup %4456 }
 0x5d7   : > { %v1666_v12 = vmul.f32 %v4457_v10, %v4453_v58  ;;  %v2253_v16 = vpop.permute.xlu0 %2252  ;;  %v1312_v10 = vld [vmem:[#allocation11] sm:$0xff] }
 0x5d9   : > { %4171 = vmatmul.mubr.msk.f32.vlgmr.msra.gmra.mrb[20].mxu1 %vm671_vm2, %v1666_v12 }
 0x5da   : > { %v4459_v13 = vpop.eup %4458  ;;  %4179 = vmatpush3.msra.mxu1 %v1902_v8  ;;  %4180 = vmatprep.mubr.msk.f32.mxu1 %vm4765_vm1, %v4764_v26 }
 0x5db   : > { %v1668_v14 = vmul.f32 %v4459_v13, %v4455_v60  ;;  %4199 = vmatprep.subr.mxu1 %v4764_v26  ;;  %v2331_v18 = vpop.permute.xlu0 %2330 }
 0x5dd   : > { %4181 = vmatmul.mubr.msk.f32.vlgmr.msra.gmra.mrb[22].mxu1 %vm671_vm2, %v1668_v14 }
 0x5de   : > { %4201 = vmatprep.mubr.msk.f32.mxu1 %vm4765_vm1, %v4764_v26 }
 0x5df   : > { %v2409_v20 = vpop.permute.xlu0 %2408 }
 0x5e1   : > { %4200 = vmatpush3.xpose.msk.msra.mxu1 %vm671_vm2, %v2175_v11 }
 0x5e2   : > { %4204 = vmatprep.subr.mxu1 %v4764_v26 }
 0x5e4   : > { %4202 = vmatmul.mubr.msk.f32.vlgmr.msra.gmra.mrb[24].mxu1 %vm671_vm2, %v2173_v15 }
 0x5e5   : > { %4205 = vmatpush3.xpose.msk.msra.mxu1 %vm671_vm2, %v2253_v16  ;;  %4206 = vmatprep.mubr.msk.f32.mxu1 %vm4765_vm1, %v4764_v26 }
 0x5e6   : > { %4209 = vmatprep.subr.mxu1 %v4764_v26 }
 0x5e8   : > { %4207 = vmatmul.mubr.msk.f32.vlgmr.msra.gmra.mrb[26].mxu1 %vm671_vm2, %v2251_v17 }
 0x5e9   : > { %4210 = vmatpush3.xpose.msk.msra.mxu1 %vm671_vm2, %v2331_v18  ;;  %4211 = vmatprep.mubr.msk.f32.mxu1 %vm4765_vm1, %v4764_v26 }
 0x5ea   : > { %4214 = vmatprep.subr.mxu1 %v4764_v26 }
 0x5ec   : > { %4212 = vmatmul.mubr.msk.f32.vlgmr.msra.gmra.mrb[28].mxu1 %vm671_vm2, %v2329_v19 }
 0x5ed   : > { %4215 = vmatpush3.xpose.msk.msra.mxu1 %vm671_vm2, %v2409_v20  ;;  %4216 = vmatprep.mubr.msk.f32.mxu1 %vm4765_vm1, %v4764_v26 }
 0x5ee   : > { %4224 = vmatprep.subr.mxu1 %v4764_v26 }
 0x5f0   : > { %4217 = vmatmul.mubr.msk.f32.vlgmr.msra.gmra.mrb[30].mxu1 %vm671_vm2, %v2407_v22 }
 0x5f1   : > { %4226 = vmatprep.mubr.msk.f32.mxu1 %vm4765_vm1, %v4764_v26 }
 0x605   : > { %v1633_v23 = vpop.xlane.xlu1 %1632 }
 0x606   : > { %v1639_v25 = vsub.f32 %v1543_v2, %v1633_v23 }
 0x608   : > { %v1645_v41 = vmul.f32 1.442695, %v1639_v25 }
 0x609   : > { %v1825_v61 = vpop.permute.xlu1 %1824 }
 0x610   : > { %v1627_v39 = vpop.xlane.xlu0 %1626 }
 0x611   : > { %v1637_v40 = vsub.f32 %v1387_v0, %v1627_v39 }
 0x613   : > { %v1641_v42 = vmul.f32 1.442695, %v1637_v40 }
 0x615   : > { %4460 = vpow2.f32 %v1641_v42 }
 0x616   : > { %4462 = vpow2.f32 %v1645_v41 }
 0x61f   : > { %v4461_v43 = vpop.eup %4460 }
 0x620   : > { %v1649_v44 = vsel %vm671_vm2, %v4461_v43, 0.0  ;;  %v4463_v45 = vpop.eup %4462 }
 0x621   : > { %1650 = vadd.xlane.f32.xlu0 %v1649_v44  ;;  %v1655_v46 = vsel %vm671_vm2, %v4463_v45, 0.0 }
 0x625   : > { %1656 = vadd.xlane.f32.xlu0 %v1655_v46 }
 0x63b   : > { %1670 = vrot.lane.b32.xlu0 %v5184_v38, %s4766_s27 }
 0x6ac   : > { %v5320_v47 = vpop.f32.mrb[20].mxu1 }
 0x6ad   : > { %v4172_v48 = vpop.f32.mrb[21].mxu1 }
 0x6ae   : > { %v1651_v49 = vpop.xlane.xlu0 %1650 }
 0x6af   : > { %4464 = vrcp.f32 %v1651_v49 }
 0x6b0   : > { %v5322_v51 = vpop.f32.mrb[22].mxu1 }
 0x6b1   : > { %v4182_v52 = vpop.f32.mrb[23].mxu1 }
 0x6b2   : > { %v1657_v53 = vpop.xlane.xlu0 %1656 }
 0x6b3   : > { %4466 = vrcp.f32 %v1657_v53 }
 0x6b6   : > { %v1671_v54 = vpop.permute.xlu0 %1670 }
 0x6b7   : > { %v2246_v55 = vpop.f32.mrb[24].mxu1  ;;  %4164 = vmatpush3.msra.mxu0 %v1671_v54 }
 0x6b8   : > { %v4203_v56 = vpop.f32.mrb[25].mxu1  ;;  %v2484_v57 = vsel %vm671_vm2, %v2246_v55, -inf  ;;  %4173 = vmatprep.subr.mxu0 %v4764_v26 }
 0x6b9   : > { %v4465_v58 = vpop.eup %4464  ;;  %2485 = vmax.xlane.f32.xlu1 %v2484_v57 }
 0x6ba   : > { %v1665_v59 = vmul.f32 %v4465_v58, %v4461_v43 }
 0x6bb   : > { %v2324_v60 = vpop.f32.mrb[26].mxu1 }
 0x6bc   : > { %v4208_v63 = vpop.f32.mrb[27].mxu1  ;;  %v2487_v0 = vsel %vm671_vm2, %v2324_v60, -inf  ;;  %4166 = vmatmul.mubr.msk.f32.vlgmr.msra.gmra.mrb[16].mxu0 %vm671_vm2, %v1665_v59 }
 0x6bd   : > { %v4467_v1 = vpop.eup %4466  ;;  %2488 = vmax.xlane.f32.xlu0 %v2487_v0  ;;  %4174 = vmatpush3.msra.mxu0 %v1825_v61 }
 0x6be   : > { %v1667_v2 = vmul.f32 %v4467_v1, %v4463_v45  ;;  %4175 = vmatprep.mubr.msk.f32.mxu0 %vm4765_vm1, %v4764_v26  ;;  %4183 = vmatprep.subr.mxu0 %v1977_v9 }
 0x6bf   : > { %v2402_v3 = vpop.f32.mrb[28].mxu1 }
 0x6c0   : > { %v4213_v4 = vpop.f32.mrb[29].mxu1  ;;  %v2490_v5 = vsel %vm671_vm2, %v2402_v3, -inf  ;;  %4176 = vmatmul.mubr.msk.f32.vlgmr.msra.gmra.mrb[18].mxu0 %vm671_vm2, %v1667_v2 }
 0x6c1   : > { %2491 = vmax.xlane.f32.xlu0 %v2490_v5  ;;  %4184 = vmatpush3.msra.mxu0 %v1977_v9 }
 0x6c2   : > { %4191 = vmatprep.subr.mxu0 %v1312_v10 }
 0x6c3   : > { %v2480_v6 = vpop.f32.mrb[30].mxu1 }
 0x6c4   : > { %v4218_v7 = vpop.f32.mrb[31].mxu1  ;;  %v2493_v8 = vsel %vm671_vm2, %v2480_v6, -inf }
 0x6c5   : > { %2494 = vmax.xlane.f32.xlu1 %v2493_v8 }
 0x746   : > { %v2486_v11 = vpop.xlane.xlu1 %2485 }
 0x747   : > { %v2496_v12 = vsub.f32 %v2246_v55, %v2486_v11 }
 0x749   : > { %v2500_v13 = vmul.f32 1.442695, %v2496_v12 }
 0x74a   : > { %v2489_v14 = vpop.xlane.xlu0 %2488 }
 0x74b   : > { %4468 = vpow2.f32 %v2500_v13  ;;  %v2497_v15 = vsub.f32 %v2324_v60, %v2489_v14 }
 0x74d   : > { %v2502_v16 = vmul.f32 1.442695, %v2497_v15 }
 0x74e   : > { %v2492_v17 = vpop.xlane.xlu0 %2491 }
 0x74f   : > { %4470 = vpow2.f32 %v2502_v16  ;;  %v2498_v18 = vsub.f32 %v2402_v3, %v2492_v17 }
 0x751   : > { %v2504_v19 = vmul.f32 1.442695, %v2498_v18 }
 0x752   : > { %v2495_v41 = vpop.xlane.xlu1 %2494 }
 0x753   : > { %4472 = vpow2.f32 %v2504_v19  ;;  %v2499_v42 = vsub.f32 %v2480_v6, %v2495_v41 }
 0x755   : > { %v4469_v20 = vpop.eup %4468  ;;  %v2506_v43 = vmul.f32 1.442695, %v2499_v42 }
 0x756   : > { %v2508_v22 = vsel %vm671_vm2, %v4469_v20, 0.0 }
 0x757   : > { %2509 = vadd.xlane.f32.xlu0 %v2508_v22  ;;  %4474 = vpow2.f32 %v2506_v43 }
 0x759   : > { %v4471_v23 = vpop.eup %4470 }
 0x75a   : > { %v2511_v25 = vsel %vm671_vm2, %v4471_v23, 0.0 }
 0x75b   : > { %2512 = vadd.xlane.f32.xlu1 %v2511_v25 }
 0x75d   : > { %v5335_v39 = vpop.eup %4472 }
 0x75e   : > { %v2514_v40 = vsel %vm671_vm2, %v5335_v39, 0.0 }
 0x75f   : > { %2515 = vadd.xlane.f32.xlu0 %v2514_v40 }
 0x761   : > { %v4475_v45 = vpop.eup %4474 }
 0x76c   : > { %2604 = vrot.lane.b32.xlu1 %v5182_v37, %s4767_s26 }
 0x770   : > { %2680 = vrot.lane.b32.xlu1 %v5171_v36, %s4767_s26 }
 0x775   : > { %2528 = vrot.lane.b32.xlu0 %v5184_v38, %s4767_s26 }
 0x779   : > { %2936 = vrot.lane.b32.xlu0 %v5134_v28, %s4768_s12 }
 0x77d   : > { %3014 = vrot.lane.b32.xlu0 %v5132_v27, %s4768_s12  ;;  %v2517_v27 = vsel %vm671_vm2, %v4475_v45, 0.0 }
 0x781   : > { %3092 = vrot.lane.b32.xlu0 %v5149_v32, %s4768_s12 }
 0x785   : > { %3090 = vrot.lane.b32.xlu0 %v5157_v34, %s4768_s12 }
 0x78f   : > { %v1742_v44 = vpop.f32.mrb[16].mxu0 }
 0x790   : > { %v4167_v46 = vpop.f32.mrb[17].mxu0  ;;  %4185 = vmatprep.mubr.msk.f32.mxu0 %vm671_vm2, %v1742_v44 }
 0x791   : > { %4186 = vmatmul.mubr.msk.f32.vlgmr.msra.gmra.mrb[20].mxu0 %vm671_vm2, %v5320_v47 }
 0x792   : > { %4192 = vmatpush3.msra.mxu0 %v1312_v10 }
 0x793   : > { %v1896_v28 = vpop.f32.mrb[18].mxu0  ;;  %4219 = vmatprep.subr.mxu0 %v4764_v26 }
 0x794   : > { %2518 = vadd.xlane.f32.xlu1 %v2517_v27  ;;  %v4177_v32 = vpop.f32.mrb[19].mxu0  ;;  %4188 = vmatprep.mubr.msk.f32.mxu0 %vm671_vm2, %v1896_v28 }
 0x795   : > { %4189 = vmatmul.mubr.msk.f32.gmra.mrb[22].mxu0 %vm671_vm2, %v5322_v51 }
 0x796   : > { %4193 = vmatprep.mubr.msk.f32.mxu0 %vm671_vm2, %v5270_v50 }
 0x799   : > { %4194 = vmatmul.mubr.msk.f32.vlgmr.msra.gmra.mrb[20].mxu0 %vm671_vm2, %v5239_v21 }
 0x79a   : > { %4196 = vmatprep.mubr.msk.f32.mxu0 %vm671_vm2, %v5282_v62 }
 0x79d   : > { %4197 = vmatmul.mubr.msk.f32.gmra.mrb[22].mxu0 %vm671_vm2, %v5241_v24 }
 0x79e   : > { %4221 = vmatprep.mubr.msk.f32.mxu0 %vm4765_vm1, %v4764_v26 }
 0x7a5   : > { %2756 = vrot.lane.b32.xlu1 %v5165_v35, %s4767_s26 }
 0x7a9   : > { %2934 = vrot.lane.b32.xlu1 %v5140_v30, %s4768_s12 }
 0x7ad   : > { %3012 = vrot.lane.b32.xlu1 %v5136_v29, %s4768_s12  ;;  %v2832_v29 = vld [vmem:[#allocation11 + $0x10] sm:$0xff] }
 0x7b1   : > { %3170 = vrot.lane.b32.xlu1 %v5145_v31, %s4768_s12 }
 0x7b5   : > { %3168 = vrot.lane.b32.xlu1 %v5151_v33, %s4768_s12 }
 0x7e4   : > { %v2510_v34 = vpop.xlane.xlu0 %2509 }
 0x7e5   : > { %4476 = vrcp.f32 %v2510_v34 }
 0x7e8   : > { %v2513_v21 = vpop.xlane.xlu1 %2512 }
 0x7e9   : > { %4478 = vrcp.f32 %v2513_v21 }
 0x7ec   : > { %v2516_v24 = vpop.xlane.xlu0 %2515  ;;  %v2605_v50 = vpop.permute.xlu1 %2604 }
 0x7ed   : > { %4480 = vrcp.f32 %v2516_v24  ;;  %4225 = vmatpush3.msra.mxu1 %v2605_v50 }
 0x7ee   : > { %4234 = vmatprep.subr.mxu1 %v4764_v26 }
 0x7ef   : > { %v4477_v30 = vpop.eup %4476 }
 0x7f0   : > { %v2524_v62 = vmul.f32 %v4477_v30, %v4469_v20  ;;  %v2529_v47 = vpop.permute.xlu0 %2528  ;;  %v2681_v48 = vpop.permute.xlu1 %2680 }
 0x7f1   : > { %4220 = vmatpush3.msra.mxu0 %v2529_v47 }
 0x7f2   : > { %4222 = vmatmul.mubr.msk.f32.vlgmr.msra.gmra.mrb[24].mxu0 %vm671_vm2, %v2524_v62  ;;  %4229 = vmatprep.subr.mxu0 %v4764_v26 }
 0x7f3   : > { %v4479_v31 = vpop.eup %4478  ;;  %4230 = vmatpush3.msra.mxu0 %v2681_v48  ;;  %4231 = vmatprep.mubr.msk.f32.mxu0 %vm4765_vm1, %v4764_v26 }
 0x7f4   : > { %v2525_v33 = vmul.f32 %v4479_v31, %v4471_v23  ;;  %4239 = vmatprep.subr.mxu0 %v2832_v29  ;;  %v2937_v56 = vpop.permute.xlu0 %2936 }
 0x7f6   : > { %4227 = vmatmul.mubr.msk.f32.vlgmr.msra.gmra.mrb[32].mxu1 %vm671_vm2, %v2525_v33 }
 0x7f7   : > { %v4481_v49 = vpop.eup %4480  ;;  %4236 = vmatprep.mubr.msk.f32.mxu1 %vm4765_vm1, %v4764_v26 }
 0x7f8   : > { %v2526_v51 = vmul.f32 %v4481_v49, %v5335_v39  ;;  %v3015_v59 = vpop.permute.xlu0 %3014 }
 0x7fa   : > { %4232 = vmatmul.mubr.msk.f32.vlgmr.msra.gmra.mrb[26].mxu0 %vm671_vm2, %v2526_v51 }
 0x7fb   : > { %4240 = vmatpush3.msra.mxu0 %v2832_v29 }
 0x7fc   : > { %4257 = vmatprep.subr.mxu0 %v4764_v26  ;;  %v3093_v2 = vpop.permute.xlu0 %3092 }
 0x800   : > { %v3091_v8 = vpop.permute.xlu0 %3090 }
 0x821   : > { %v2519_v52 = vpop.xlane.xlu1 %2518 }
 0x822   : > { %4482 = vrcp.f32 %v2519_v52 }
 0x825   : > { %v2757_v53 = vpop.permute.xlu1 %2756 }
 0x826   : > { %4235 = vmatpush3.msra.mxu1 %v2757_v53 }
 0x827   : > { %4247 = vmatprep.subr.mxu1 %v4764_v26 }
 0x829   : > { %v2935_v54 = vpop.permute.xlu1 %2934 }
 0x82c   : > { %v4483_v55 = vpop.eup %4482 }
 0x82d   : > { %v2527_v57 = vmul.f32 %v4483_v55, %v4475_v45  ;;  %v3013_v58 = vpop.permute.xlu1 %3012 }
 0x82f   : > { %4237 = vmatmul.mubr.msk.f32.vlgmr.msra.gmra.mrb[34].mxu1 %vm671_vm2, %v2527_v57  ;;  %v3594_v57 = vld [vmem:[#allocation11 + $0x18] sm:$0xff] }
 0x830   : > { %4248 = vmatpush3.xpose.msk.msra.mxu1 %vm671_vm2, %v2937_v56  ;;  %4249 = vmatprep.mubr.msk.f32.mxu1 %vm4765_vm1, %v4764_v26 }
 0x831   : > { %4252 = vmatprep.subr.mxu1 %v4764_v26  ;;  %v3171_v60 = vpop.permute.xlu1 %3170 }
 0x833   : > { %4250 = vmatmul.mubr.msk.f32.vlgmr.msra.gmra.mrb[36].mxu1 %vm671_vm2, %v2935_v54 }
 0x834   : > { %4253 = vmatpush3.xpose.msk.msra.mxu1 %vm671_vm2, %v3015_v59  ;;  %4254 = vmatprep.mubr.msk.f32.mxu1 %vm4765_vm1, %v4764_v26 }
 0x835   : > { %4262 = vmatprep.subr.mxu1 %v4764_v26  ;;  %v3169_v61 = vpop.permute.xlu1 %3168 }
 0x837   : > { %4255 = vmatmul.mubr.msk.f32.vlgmr.msra.gmra.mrb[38].mxu1 %vm671_vm2, %v3013_v58 }
 0x838   : > { %4263 = vmatpush3.xpose.msk.msra.mxu1 %vm671_vm2, %v3171_v60  ;;  %4264 = vmatprep.mubr.msk.f32.mxu1 %vm4765_vm1, %v4764_v26 }
 0x839   : > { %4272 = vmatprep.subr.mxu1 %v4764_v26 }
 0x83b   : > { %4265 = vmatmul.mubr.msk.f32.vlgmr.msra.gmra.mrb[40].mxu1 %vm671_vm2, %v3169_v61 }
 0x83c   : > { %4274 = vmatprep.mubr.msk.f32.mxu1 %vm4765_vm1, %v4764_v26 }
 0x8c5   : > { %v2600_v63 = vpop.f32.mrb[24].mxu0 }
 0x8c6   : > { %v4223_v0 = vpop.f32.mrb[25].mxu0  ;;  %4241 = vmatprep.mubr.msk.f32.mxu0 %vm671_vm2, %v2600_v63 }
 0x8c9   : > { %v2676_v1 = vpop.f32.mrb[32].mxu1 }
 0x8ca   : > { %v4228_v3 = vpop.f32.mrb[33].mxu1  ;;  %4242 = vmatmul.mubr.msk.f32.vlgmr.msra.gmra.mrb[20].mxu0 %vm671_vm2, %v2676_v1 }
 0x8cb   : > { %4258 = vmatpush3.xpose.msk.msra.mxu0 %vm671_vm2, %v3093_v2 }
 0x8cc   : > { %4267 = vmatprep.subr.mxu0 %v4764_v26 }
 0x8cd   : > { %v2752_v4 = vpop.f32.mrb[26].mxu0 }
 0x8ce   : > { %v4233_v5 = vpop.f32.mrb[27].mxu0  ;;  %4244 = vmatprep.mubr.msk.f32.mxu0 %vm671_vm2, %v2752_v4 }
 0x902   : > { %v2828_v6 = vpop.f32.mrb[34].mxu1 }
 0x903   : > { %v4238_v7 = vpop.f32.mrb[35].mxu1  ;;  %4245 = vmatmul.mubr.msk.f32.gmra.mrb[22].mxu0 %vm671_vm2, %v2828_v6 }
 0x904   : > { %4259 = vmatprep.mubr.msk.f32.mxu0 %vm4765_vm1, %v4764_v26 }
 0x906   : > { %v3008_v9 = vpop.f32.mrb[36].mxu1 }
 0x907   : > { %v4251_v10 = vpop.f32.mrb[37].mxu1  ;;  %4260 = vmatmul.mubr.msk.f32.vlgmr.msra.gmra.mrb[28].mxu0 %vm671_vm2, %v3091_v8  ;;  %v3246_v11 = vsel %vm671_vm2, %v3008_v9, -inf }
 0x908   : > { %3247 = vmax.xlane.f32.xlu0 %v3246_v11  ;;  %4269 = vmatprep.mubr.msk.f32.mxu0 %vm4765_vm1, %v4764_v26 }
 0x90a   : > { %v3086_v12 = vpop.f32.mrb[38].mxu1 }
 0x90b   : > { %v4256_v13 = vpop.f32.mrb[39].mxu1  ;;  %v3249_v14 = vsel %vm671_vm2, %v3086_v12, -inf }
 0x90c   : > { %3250 = vmax.xlane.f32.xlu1 %v3249_v14 }
 0x90e   : > { %v3242_v15 = vpop.f32.mrb[40].mxu1 }
 0x90f   : > { %v4266_v16 = vpop.f32.mrb[41].mxu1  ;;  %v3255_v43 = vsel %vm671_vm2, %v3242_v15, -inf }
 0x995   : > { %v3248_v23 = vpop.xlane.xlu0 %3247 }
 0x996   : > { %v3258_v25 = vsub.f32 %v3008_v9, %v3248_v23 }
 0x998   : > { %v3262_v39 = vmul.f32 1.442695, %v3258_v25 }
 0x999   : > { %v3251_v17 = vpop.xlane.xlu1 %3250 }
 0x99a   : > { %v3259_v18 = vsub.f32 %v3086_v12, %v3251_v17 }
 0x99c   : > { %v3264_v19 = vmul.f32 1.442695, %v3259_v18 }
 0x99e   : > { %4484 = vpow2.f32 %v3264_v19 }
 0x99f   : > { %4486 = vpow2.f32 %v3262_v39 }
 0x9a8   : > { %v4485_v20 = vpop.eup %4484 }
 0x9a9   : > { %v3273_v22 = vsel %vm671_vm2, %v4485_v20, 0.0  ;;  %v4487_v44 = vpop.eup %4486 }
 0x9aa   : > { %3274 = vadd.xlane.f32.xlu1 %v3273_v22  ;;  %v3270_v45 = vsel %vm671_vm2, %v4487_v44, 0.0 }
 0x9da   : > { %v3164_v40 = vpop.f32.mrb[28].mxu0 }
 0x9db   : > { %v4261_v41 = vpop.f32.mrb[29].mxu0  ;;  %v3252_v42 = vsel %vm671_vm2, %v3164_v40, -inf }
 0x9dc   : > { %3253 = vmax.xlane.f32.xlu0 %v3252_v42 }
 0x9e0   : > { %3256 = vmax.xlane.f32.xlu0 %v3255_v43 }
 0x9e4   : > { %3271 = vadd.xlane.f32.xlu0 %v3270_v45 }
 0xa37   : > { %v3275_v29 = vpop.xlane.xlu1 %3274 }
 0xa69   : > { %v3254_v46 = vpop.xlane.xlu0 %3253 }
 0xa6a   : > { %v3260_v27 = vsub.f32 %v3164_v40, %v3254_v46 }
 0xa6c   : > { %v3266_v28 = vmul.f32 1.442695, %v3260_v27 }
 0xa6d   : > { %v3257_v32 = vpop.xlane.xlu0 %3256 }
 0xa6e   : > { %4488 = vpow2.f32 %v3266_v28  ;;  %v3261_v34 = vsub.f32 %v3242_v15, %v3257_v32 }
 0xa70   : > { %v3268_v21 = vmul.f32 1.442695, %v3261_v34 }
 0xa71   : > { %v3272_v47 = vpop.xlane.xlu0 %3271 }
 0xa72   : > { %4490 = vpow2.f32 %v3268_v21 }
 0xa73   : > { %4492 = vrcp.f32 %v3272_v47 }
 0xa74   : > { %4494 = vrcp.f32 %v3275_v29 }
 0xa78   : > { %v4489_v24 = vpop.eup %4488 }
 0xa79   : > { %v3276_v50 = vsel %vm671_vm2, %v4489_v24, 0.0 }
 0xa7a   : > { %3277 = vadd.xlane.f32.xlu0 %v3276_v50 }
 0xa7c   : > { %v4491_v30 = vpop.eup %4490 }
 0xa7d   : > { %v3279_v62 = vsel %vm671_vm2, %v4491_v30, 0.0  ;;  %v4493_v31 = vpop.eup %4492 }
 0xa7e   : > { %3280 = vadd.xlane.f32.xlu1 %v3279_v62  ;;  %v3286_v33 = vmul.f32 %v4493_v31, %v4487_v44 }
 0xa8f   : > { %3366 = vrot.lane.b32.xlu1 %v5182_v37, %s4768_s12  ;;  %v4495_v37 = vpop.eup %4494 }
 0xa90   : > { %3290 = vrot.lane.b32.xlu0 %v5184_v38, %s4768_s12 }
 0xa93   : > { %3442 = vrot.lane.b32.xlu1 %v5171_v36, %s4768_s12 }
 0xa97   : > { %3518 = vrot.lane.b32.xlu1 %v5165_v35, %s4768_s12  ;;  %v3287_v35 = vmul.f32 %v4495_v37, %v4485_v20 }
 0xb07   : > { %v3278_v48 = vpop.xlane.xlu0 %3277 }
 0xb08   : > { %4496 = vrcp.f32 %v3278_v48 }
 0xb0b   : > { %v3281_v49 = vpop.xlane.xlu1 %3280  ;;  %v3291_v51 = vpop.permute.xlu0 %3290 }
 0xb0c   : > { %4498 = vrcp.f32 %v3281_v49  ;;  %4268 = vmatpush3.msra.mxu0 %v3291_v51 }
 0xb0d   : > { %4270 = vmatmul.mubr.msk.f32.vlgmr.msra.gmra.mrb[30].mxu0 %vm671_vm2, %v3286_v33  ;;  %4277 = vmatprep.subr.mxu0 %v4764_v26 }
 0xb0e   : > { %4279 = vmatprep.mubr.msk.f32.mxu0 %vm4765_vm1, %v4764_v26 }
 0xb0f   : > { %v3367_v36 = vpop.permute.xlu1 %3366 }
 0xb10   : > { %4273 = vmatpush3.msra.mxu1 %v3367_v36 }
 0xb11   : > { %4275 = vmatmul.mubr.msk.f32.vlgmr.msra.gmra.mrb[42].mxu1 %vm671_vm2, %v3287_v35  ;;  %4282 = vmatprep.subr.mxu1 %v4764_v26 }
 0xb12   : > { %v4497_v38 = vpop.eup %4496  ;;  %4284 = vmatprep.mubr.msk.f32.mxu1 %vm4765_vm1, %v4764_v26 }
 0xb13   : > { %v3288_v52 = vmul.f32 %v4497_v38, %v4489_v24  ;;  %v3443_v53 = vpop.permute.xlu1 %3442 }
 0xb14   : > { %4278 = vmatpush3.msra.mxu0 %v3443_v53 }
 0xb15   : > { %4280 = vmatmul.mubr.msk.f32.vlgmr.msra.gmra.mrb[32].mxu0 %vm671_vm2, %v3288_v52  ;;  %4287 = vmatprep.subr.mxu0 %v3594_v57 }
 0xb16   : > { %v4499_v54 = vpop.eup %4498  ;;  %4288 = vmatpush3.msra.mxu0 %v3594_v57 }
 0xb17   : > { %v3289_v55 = vmul.f32 %v4499_v54, %v4491_v30  ;;  %v3519_v56 = vpop.permute.xlu1 %3518 }
 0xb18   : > { %4283 = vmatpush3.msra.mxu1 %v3519_v56 }
 0xb19   : > { %4285 = vmatmul.mubr.msk.f32.vlgmr.msra.gmra.mrb[44].mxu1 %vm671_vm2, %v3289_v55 }
 0xbe0   : > { %v3362_v58 = vpop.f32.mrb[30].mxu0 }
 0xbe1   : > { %v4271_v59 = vpop.f32.mrb[31].mxu0  ;;  %4289 = vmatprep.mubr.msk.f32.mxu0 %vm671_vm2, %v3362_v58 }
 0xbe4   : > { %v3438_v26 = vpop.f32.mrb[42].mxu1 }
 0xbe5   : > { %v4276_v60 = vpop.f32.mrb[43].mxu1  ;;  %4290 = vmatmul.mubr.msk.f32.vlgmr.msra.gmra.mrb[20].mxu0 %vm671_vm2, %v3438_v26 }
 0xbe8   : > { %v3514_v61 = vpop.f32.mrb[32].mxu0 }
 0xbe9   : > { %v4281_v63 = vpop.f32.mrb[33].mxu0  ;;  %4292 = vmatprep.mubr.msk.f32.mxu0 %vm671_vm2, %v3514_v61 }
 0xbec   : > { %v3590_v0 = vpop.f32.mrb[44].mxu1 }
 0xbed   : > { %v4286_v1 = vpop.f32.mrb[45].mxu1  ;;  %4293 = vmatmul.mubr.msk.f32.gmra.mrb[22].mxu0 %vm671_vm2, %v3590_v0 }
 0xcb8   : > { %v4291_v2 = vpop.f32.mrb[20].mxu0 }
 0xcb9   : > { %3697 = vst.msk [vmem:[%s367_s13 + $0x8] sm:$0xff] %vm383_vm0, %v4291_v2  ;;  %v3673_v3 = vpop.f32.mrb[21].mxu0 }
 0xcba   : > { %3696 = vst.msk [vmem:[%s367_s13] sm:$0xff] %vm383_vm0, %v3673_v3 }
 0xcc0   : > { %v4294_v4 = vpop.f32.mrb[22].mxu0 }
 0xcc1   : > { %3699 = vst.msk [vmem:[%s367_s13 + $0x18] sm:$0xff] %vm383_vm0, %v4294_v4  ;;  %v3683_v5 = vpop.f32.mrb[23].mxu0 }
 0xcc2   : > { %3698 = vst.msk [vmem:[%s367_s13 + $0x10] sm:$0xff] %vm383_vm0, %v3683_v5 }
 0xcc3   : > { %4685 = shalt.err (!%p4682_p8)
}
 0xcc4   : > { %s4686_s17 = scalar_lea.hbm %s5461_s7, 512  ;;  %s4690_s20 = scalar_lea.hbm %s5513_s6, 1024 }
 0xcc5   : > { %p4687_p11 = scmp.ne.s32.totalorder %s5461_s7, %s4686_s17  ;;  %p4691_p1 = scmp.lt.u32.totalorder %s5461_s7, %s5513_s6 }
 0xcc6   : > { %p4692_p2 = scmp.lt.u32.totalorder %s4690_s20, %s4686_s17  ;;  %p4694_p0 = scmp.lt.u32.totalorder %s4686_s17, %s5461_s7 }
 0xcc7   : > { %p4688_p7 = pnand %p4687_p11, %p4978_p10 }
 0xcc8   : > { %p4693_p13 = por %p4692_p2, %p4691_p1 }
 0xcc9   : > { %p4689_p12 = pneg %p4688_p7 }
 0xcca   : > { %p4695_p4 = por %p4694_p0, %p4693_p13 }
 0xccc   : > { %p4696_p6 = pnand %p4695_p4, %p4689_p12 }
 0xcce   : > { %4699 = shalt.err (!%p4696_p6)
}
 0xccf   : > { %s4770_s12 = smov 128   ;;  %s4771_s13 = smov 8  }
 0xcd0   : > { %4355 = dma.vmem_to_hbm [thread:$0]  (%p4978_p10), %s5456_s2, 512, %s5461_s7, %s3701_s10, %s4770_s12, %s4770_s12, %s4771_s13  }
 0xcd1 PF: > { %s3729_s3 = sand.u32 1, %s4742_s21   ;;  %p5545_p3 = scmp.ne.s32.totalorder %s5525_s28, 0 }
 0xcd2   : > { %p5546_p5 = scmp.ge.s32.totalorder %s4754_s24, 2  ;;  %s3730_s19 = scalar_lea.sflag [#allocation4], %s3729_s3 }
 0xcd4   : > { %p4378_p9 = pnand %p5546_p5, %p5545_p3 }
 0xcd6   : > { %4737 = dma.done.wait (!%p4378_p9), %s3730_s19, 512  }
 0xcd7   : > { %4739 = vsyncadd (!%p4378_p9), %s3730_s19, 4294966784  ;;  %p24_p8 = scmp.ge.s32.totalorder %s4968_s18, 4   ;;  %s5547_s21 = smov %s4746_s22 }
 0xcd8   : > { %s5548_s22 = smov %s4750_s23  ;;  %s5549_s23 = smov %s4984_s16 }
 0xcd9   : > { %s5550_s24 = smov %s4968_s18  ;;  %26 = sbr.rel (!%p24_p8) target bundleno = 13 (0xd), region = 118 }
 0xce0   :  { %3735 = vsyncpa [#allocation3], 1 }
 0xce1   :  { %3737 = vsyncpa [#allocation3 + $0x1], 1 }
 0xce2   :  { %3738 = vsyncpa [#allocation6], 1 }
 0xce3   :  { %3740 = vsyncpa [#allocation6 + $0x1], 1 }
 0xce4   :  { %3741 = vsyncpa [#allocation9], 1 }
 0xce5   :  { %3742 = vsyncpa [#allocation12], 1 }
 0xce6   :  { %3743 = vsyncpa [#allocation4], 1 }
 0xce7   :  { %3745 = vsyncpa [#allocation4 + $0x1], 1 }

</bundles_post_ra>
